<compile_context>
chip_gen: v7x
topology: tpu7x:2x2x1
jax: 0.10.0
libtpu: 0.0.40
codegen_flags: <defaults>
</compile_context>

<pallas_src>
import math
from functools import partial

import numpy as np
import jax
import jax.numpy as jnp
from jax import lax
from jax.experimental import pallas as pl
from jax.experimental.pallas import tpu as pltpu

NEG_INF = -1e30          # plain Python float: safe to use inside kernels (literal)
LN_EPS = 1e-5
_F_CHUNK = 2048          # FFN hidden-dim chunk inside the fused FFN kernel


# ------------------------- per-generation configuration ---------------------- #

def _device_kind():
    try:
        return jax.devices()[0].device_kind.lower()
    except Exception:
        return ""


_KIND = _device_kind()
if ("v7" in _KIND) or ("tpu7" in _KIND):
    # v7x: 64 MiB VMEM per core -> single-buffer the resident weight blocks.
    _TM, _TN, _VMEM_LIMIT, _WEIGHT_BUF = 256, 2048, 44 * 1024 * 1024, pl.Buffered(1)
elif ("v5" in _KIND) or ("v6" in _KIND):
    # 128 MiB VMEM, HBM-bound kernels: bigger row/column tiles, deeper pipelining.
    _TM, _TN, _VMEM_LIMIT, _WEIGHT_BUF = 512, 4096, 96 * 1024 * 1024, None
else:
    # Unknown hardware (incl. interpret mode): conservative defaults.
    _TM, _TN, _VMEM_LIMIT, _WEIGHT_BUF = 256, 2048, None, None


def _cparams(dim_sem):
    kw = dict(dimension_semantics=dim_sem)
    if _VMEM_LIMIT is not None:
        kw["vmem_limit_bytes"] = _VMEM_LIMIT
    return pltpu.CompilerParams(**kw)


def _wspec(shape, index_map):
    """BlockSpec for a VMEM-resident weight block (optionally single-buffered)."""
    if _WEIGHT_BUF is None:
        return pl.BlockSpec(shape, index_map)
    return pl.BlockSpec(shape, index_map, pipeline_mode=_WEIGHT_BUF)


# ------------------------------ tiling helpers ------------------------------ #

def _round_up(x, m):
    return (x + m - 1) // m * m


def _pad_axis(x, axis, size):
    if x.shape[axis] == size:
        return x
    cfg = [(0, 0)] * x.ndim
    cfg[axis] = (0, size - x.shape[axis])
    return jnp.pad(x, cfg)


def _row_tiling(M):
    """M is guaranteed a multiple of 8 (sequence padding done once in forward).
    -> (row tile, num row tiles); the tile always divides M exactly."""
    assert M % 8 == 0, M
    if M <= _TM:
        return M, 1
    tm = (_TM // 8) * 8
    while M % tm != 0:
        tm -= 8
    return tm, M // tm


def _col_tiling(N):
    """Pick a column tile that divides N exactly (no padding).  Falls back to a
    single full-width tile if no 128-multiple divisor <= _TN exists."""
    if N <= _TN:
        return N, 1
    t = (_TN // 128) * 128
    while t >= 128:
        if N % t == 0:
            return t, N // t
        t -= 128
    return N, 1


# ------------------------------- Pallas kernels ------------------------------ #

def _linear_kernel(x_ref, w_ref, b_ref, o_ref):
    # bf16 x (TM,K) @ bf16 w (K,TN) -> f32 acc, + f32 bias
    acc = jnp.dot(x_ref[...], w_ref[...], preferred_element_type=jnp.float32)
    o_ref[...] = (acc + b_ref[...]).astype(o_ref.dtype)


def pallas_linear(x, w_t, b, out_dtype=jnp.bfloat16):
    """x: (..., K) bf16; w_t: (K, N) bf16 (pre-transposed); b: (N,) f32."""
    *lead, K = x.shape
    N = w_t.shape[1]
    M = math.prod(lead) if lead else 1
    TM, nm = _row_tiling(M)
    TN, nn_ = _col_tiling(N)

    x2 = x.reshape(M, K)
    b2 = b.reshape(1, N).astype(jnp.float32)

    if nn_ == 1:
        # Single column tile: 1-D row grid (keeps both v7x cores busy).
        out = pl.pallas_call(
            _linear_kernel,
            out_shape=jax.ShapeDtypeStruct((M, N), out_dtype),
            grid=(nm,),
            in_specs=[
                pl.BlockSpec((TM, K), lambda i: (i, 0)),
                _wspec((K, N), lambda i: (0, 0)),
                pl.BlockSpec((1, N), lambda i: (0, 0)),
            ],
            out_specs=pl.BlockSpec((TM, N), lambda i: (i, 0)),
            compiler_params=_cparams(("parallel",)),
        )(x2, w_t, b2)
    else:
        # Weight-stationary over column tiles; inner loop over row tiles.
        out = pl.pallas_call(
            _linear_kernel,
            out_shape=jax.ShapeDtypeStruct((M, N), out_dtype),
            grid=(nn_, nm),
            in_specs=[
                pl.BlockSpec((TM, K), lambda j, i: (i, 0)),
                _wspec((K, TN), lambda j, i: (0, j)),
                pl.BlockSpec((1, TN), lambda j, i: (0, j)),
            ],
            out_specs=pl.BlockSpec((TM, TN), lambda j, i: (i, j)),
            compiler_params=_cparams(("parallel", "parallel")),
        )(x2, w_t, b2)
    return out.reshape(*lead, N)


def _linear_add_ln_kernel(a_ref, res_ref, w_ref, b_ref, g_ref, beta_ref, o_ref):
    # LayerNorm(res + (a @ w + b))   -- matmul in bf16, LN math in f32
    acc = jnp.dot(a_ref[...], w_ref[...], preferred_element_type=jnp.float32) + b_ref[...]
    h = acc + res_ref[...].astype(jnp.float32)
    mean = jnp.mean(h, axis=-1, keepdims=True)
    c = h - mean
    var = jnp.mean(c * c, axis=-1, keepdims=True)
    o_ref[...] = (c * lax.rsqrt(var + LN_EPS) * g_ref[...] + beta_ref[...]).astype(o_ref.dtype)


def pallas_linear_add_ln(a, res, w_t, b, g, beta):
    """LayerNorm(res + Linear(a)) fused. a,res: (..., E) bf16; w_t: (E,E) bf16."""
    *lead, E = a.shape
    M = math.prod(lead)
    TM, nm = _row_tiling(M)
    out = pl.pallas_call(
        _linear_add_ln_kernel,
        out_shape=jax.ShapeDtypeStruct((M, E), jnp.bfloat16),
        grid=(nm,),
        in_specs=[
            pl.BlockSpec((TM, E), lambda i: (i, 0)),
            pl.BlockSpec((TM, E), lambda i: (i, 0)),
            _wspec((E, E), lambda i: (0, 0)),
            pl.BlockSpec((1, E), lambda i: (0, 0)),
            pl.BlockSpec((1, E), lambda i: (0, 0)),
            pl.BlockSpec((1, E), lambda i: (0, 0)),
        ],
        out_specs=pl.BlockSpec((TM, E), lambda i: (i, 0)),
        compiler_params=_cparams(("parallel",)),
    )(a.reshape(M, E), res.reshape(M, E), w_t,
      b.reshape(1, E).astype(jnp.float32),
      g.reshape(1, E).astype(jnp.float32), beta.reshape(1, E).astype(jnp.float32))
    return out.reshape(*lead, E)


def _ffn_res_ln_kernel(x_ref, w1_ref, b1_ref, w2_ref, b2_ref, g_ref, beta_ref, o_ref):
    # LayerNorm(x + linear2(relu(linear1(x)))), accumulating over F-chunks so the
    # (TM, F) f32 intermediate never lives all at once.
    x = x_ref[...]
    F = w1_ref.shape[1]
    acc = x.astype(jnp.float32) + b2_ref[...]       # residual + bias2 as acc init
    step = F if F <= _F_CHUNK else _F_CHUNK
    f0 = 0
    while f0 < F:                                   # static (unrolled at trace time)
        f1 = min(f0 + step, F)
        h = jnp.dot(x, w1_ref[:, f0:f1], preferred_element_type=jnp.float32) + b1_ref[:, f0:f1]
        h = jnp.maximum(h, 0.0).astype(x.dtype)
        acc = acc + jnp.dot(h, w2_ref[f0:f1, :], preferred_element_type=jnp.float32)
        f0 = f1
    mean = jnp.mean(acc, axis=-1, keepdims=True)
    c = acc - mean
    var = jnp.mean(c * c, axis=-1, keepdims=True)
    o_ref[...] = (c * lax.rsqrt(var + LN_EPS) * g_ref[...] + beta_ref[...]).astype(o_ref.dtype)


def pallas_ffn_res_ln(x, w1_t, b1, w2_t, b2, g, beta):
    """LayerNorm(x + FFN(x)) fused. x: (..., E) bf16; w1_t: (E,F); w2_t: (F,E) bf16."""
    *lead, E = x.shape
    F = w1_t.shape[1]
    M = math.prod(lead)
    TM, nm = _row_tiling(M)
    out = pl.pallas_call(
        _ffn_res_ln_kernel,
        out_shape=jax.ShapeDtypeStruct((M, E), jnp.bfloat16),
        grid=(nm,),
        in_specs=[
            pl.BlockSpec((TM, E), lambda i: (i, 0)),
            _wspec((E, F), lambda i: (0, 0)),
            pl.BlockSpec((1, F), lambda i: (0, 0)),
            _wspec((F, E), lambda i: (0, 0)),
            pl.BlockSpec((1, E), lambda i: (0, 0)),
            pl.BlockSpec((1, E), lambda i: (0, 0)),
            pl.BlockSpec((1, E), lambda i: (0, 0)),
        ],
        out_specs=pl.BlockSpec((TM, E), lambda i: (i, 0)),
        compiler_params=_cparams(("parallel",)),
    )(x.reshape(M, E), w1_t, b1.reshape(1, F).astype(jnp.float32), w2_t,
      b2.reshape(1, E).astype(jnp.float32),
      g.reshape(1, E).astype(jnp.float32), beta.reshape(1, E).astype(jnp.float32))
    return out.reshape(*lead, E)


def _ln_kernel(x_ref, g_ref, b_ref, o_ref):
    x = x_ref[...].astype(jnp.float32)
    mean = jnp.mean(x, axis=-1, keepdims=True)
    c = x - mean
    var = jnp.mean(c * c, axis=-1, keepdims=True)
    o_ref[...] = (c * lax.rsqrt(var + LN_EPS) * g_ref[...] + b_ref[...]).astype(o_ref.dtype)


def pallas_layer_norm(x, g, b):
    *lead, E = x.shape
    M = math.prod(lead)
    TM, nm = _row_tiling(M)
    out = pl.pallas_call(
        _ln_kernel,
        out_shape=jax.ShapeDtypeStruct((M, E), jnp.bfloat16),
        grid=(nm,),
        in_specs=[
            pl.BlockSpec((TM, E), lambda i: (i, 0)),
            pl.BlockSpec((1, E), lambda i: (0, 0)),
            pl.BlockSpec((1, E), lambda i: (0, 0)),
        ],
        out_specs=pl.BlockSpec((TM, E), lambda i: (i, 0)),
        compiler_params=_cparams(("parallel",)),
    )(x.reshape(M, E), g.reshape(1, E).astype(jnp.float32),
      b.reshape(1, E).astype(jnp.float32))
    return out.reshape(*lead, E)


def _attn_kernel(q_ref, k_ref, v_ref, kpm_ref, o_ref, *, causal):
    # One batch element, all heads at once: softmax(q @ k^T + bias) @ v
    # (q is pre-scaled by 1/sqrt(Dh)).  No captured constants: only Python
    # float literals are used for masking.
    q = q_ref[0]                       # (H, Sq, Dh) bf16
    k = k_ref[0]                       # (H, Sk, Dh) bf16
    v = v_ref[0]                       # (H, Sk, Dh) bf16
    s = jnp.einsum("hqd,hkd->hqk", q, k,
                   preferred_element_type=jnp.float32)        # (H, Sq, Sk) f32
    s = s + kpm_ref[...]               # (1, 1, Sk) additive key-padding bias
    if causal:
        H, Sq, Sk = s.shape
        r = lax.broadcasted_iota(jnp.int32, (H, Sq, Sk), 1)
        c = lax.broadcasted_iota(jnp.int32, (H, Sq, Sk), 2)
        s = jnp.where(c > r, NEG_INF, s)
    s = s - jnp.max(s, axis=-1, keepdims=True)
    p = jnp.exp(s)
    p = p * pl.reciprocal(jnp.sum(p, axis=-1, keepdims=True), approx=True)
    o_ref[0] = jnp.einsum("hqk,hkd->hqd", p.astype(v.dtype), v,
                          preferred_element_type=jnp.float32).astype(o_ref.dtype)


def pallas_attention(q, k, v, kpm_bias, causal):
    """q: (B, H, Sq, Dh), k/v: (B, H, Sk, Dh) bf16, kpm_bias: additive (B, 1, Sk) f32."""
    B, H, Sq, Dh = q.shape
    Sk = k.shape[2]
    kern = partial(_attn_kernel, causal=causal)
    return pl.pallas_call(
        kern,
        out_shape=jax.ShapeDtypeStruct((B, H, Sq, Dh), jnp.bfloat16),
        grid=(B,),
        in_specs=[
            pl.BlockSpec((1, H, Sq, Dh), lambda b: (b, 0, 0, 0)),
            pl.BlockSpec((1, H, Sk, Dh), lambda b: (b, 0, 0, 0)),
            pl.BlockSpec((1, H, Sk, Dh), lambda b: (b, 0, 0, 0)),
            pl.BlockSpec((1, 1, Sk), lambda b: (b, 0, 0)),
        ],
        out_specs=pl.BlockSpec((1, H, Sq, Dh), lambda b: (b, 0, 0, 0)),
        compiler_params=_cparams(("parallel",)),
    )(q, k, v, kpm_bias)


# --------------------------- model building blocks --------------------------- #

def _split_heads(t, nhead):
    B, S, E = t.shape
    Dh = E // nhead
    return t.reshape(B, S, nhead, Dh).transpose(0, 2, 1, 3)     # (B, H, S, Dh)


def _merge_heads(t):
    B, H, S, Dh = t.shape
    return t.transpose(0, 2, 1, 3).reshape(B, S, H * Dh)


def _kpm_bias(mask):
    """bool (B, Sk) key-padding mask (True = pad) -> additive (B, 1, Sk) f32."""
    return jnp.where(mask, NEG_INF, 0.0)[:, None, :].astype(jnp.float32)


def encoder_layer(x, p, nhead, src_kpm):
    E = x.shape[-1]
    qkv = pallas_linear(x, p["sa"]["wqkv_t"], p["sa"]["bqkv"])        # (B, S, 3E)
    q = _split_heads(qkv[..., :E], nhead)
    k = _split_heads(qkv[..., E:2 * E], nhead)
    v = _split_heads(qkv[..., 2 * E:], nhead)
    a = _merge_heads(pallas_attention(q, k, v, src_kpm, causal=False))
    x = pallas_linear_add_ln(a, x, p["sa"]["wo_t"], p["sa"]["bo"], p["norm1_w"], p["norm1_b"])
    x = pallas_ffn_res_ln(x, p["w1_t"], p["b1"], p["w2_t"], p["b2"], p["norm2_w"], p["norm2_b"])
    return x


def decoder_layer(y, memory, p, nhead, tgt_kpm, mem_kpm):
    E = y.shape[-1]
    # masked self-attention
    qkv = pallas_linear(y, p["sa"]["wqkv_t"], p["sa"]["bqkv"])        # (B, T, 3E)
    q = _split_heads(qkv[..., :E], nhead)
    k = _split_heads(qkv[..., E:2 * E], nhead)
    v = _split_heads(qkv[..., 2 * E:], nhead)
    a = _merge_heads(pallas_attention(q, k, v, tgt_kpm, causal=True))
    y = pallas_linear_add_ln(a, y, p["sa"]["wo_t"], p["sa"]["bo"], p["norm1_w"], p["norm1_b"])
    # cross-attention
    q = _split_heads(pallas_linear(y, p["ca"]["wq_t"], p["ca"]["bq"]), nhead)
    kv = pallas_linear(memory, p["ca"]["wkv_t"], p["ca"]["bkv"])      # (B, S, 2E)
    k = _split_heads(kv[..., :E], nhead)
    v = _split_heads(kv[..., E:], nhead)
    a = _merge_heads(pallas_attention(q, k, v, mem_kpm, causal=False))
    y = pallas_linear_add_ln(a, y, p["ca"]["wo_t"], p["ca"]["bo"], p["norm2_w"], p["norm2_b"])
    # feed-forward
    y = pallas_ffn_res_ln(y, p["w1_t"], p["b1"], p["w2_t"], p["b2"], p["norm3_w"], p["norm3_b"])
    return y


def transformer_s2s_forward(prep, enc_input, dec_input,
                            input_key_mask, output_key_mask, out_offsets, nhead):
    emb_w, pe = prep["emb"], prep["pe"]
    V = emb_w.shape[0]                        # true vocab size (weights are padded)
    B, S = enc_input.shape
    T = dec_input.shape[1]

    # Pad sequence lengths ONCE so B*seq is a multiple of 8; padded positions are
    # marked in the key-padding masks and the final logits are sliced once.
    Sp = _round_up(S, 8)
    Tp = _round_up(T, 8)
    enc_ids = _pad_axis(enc_input, 1, Sp)
    dec_ids = _pad_axis(dec_input, 1, Tp)

    src_pad = jnp.zeros((B, S), bool) if input_key_mask is None else input_key_mask
    tgt_pad = jnp.zeros((B, T), bool) if output_key_mask is None else output_key_mask
    if Sp != S:
        src_pad = jnp.concatenate([src_pad, jnp.ones((B, Sp - S), bool)], axis=1)
    if Tp != T:
        tgt_pad = jnp.concatenate([tgt_pad, jnp.ones((B, Tp - T), bool)], axis=1)
    src_kpm = _kpm_bias(src_pad)
    tgt_kpm = _kpm_bias(tgt_pad)

    # ----- encode -----
    x = jnp.take(emb_w, enc_ids, axis=0) + pe[:Sp][None, :, :]   # PositionalEncoding
    x = x.astype(jnp.bfloat16)                                   # TODO(synk): dropout = identity
    for lp in prep["enc_layers"]:
        x = encoder_layer(x, lp, nhead, src_kpm)
    memory = pallas_layer_norm(x, prep["final_norm_w"], prep["final_norm_b"])

    # ----- decode -----
    y = jnp.take(emb_w, dec_ids, axis=0)
    if out_offsets is not None:
        off = out_offsets
        if off.shape[-1] != Tp:
            off = _pad_axis(off, off.ndim - 1, Tp)
        y = y + pe[off]                                          # pe.squeeze(0)[offsets]
    else:
        y = y + pe[:Tp][None, :, :]
    y = y.astype(jnp.bfloat16)
    for lp in prep["dec_layers"]:
        y = decoder_layer(y, memory, lp, nhead, tgt_kpm, src_kpm)
    y = pallas_layer_norm(y, prep["final_norm_w"], prep["final_norm_b"])

    # Final vocab projection (weights padded once in prepare_params); slice once.
    # TODO(synk): keep f32 logits to match the PyTorch output; emit bf16 if the
    #             downstream consumer tolerates it (halves the largest HBM write).
    logits = pallas_linear(y, prep["lin_w_t"], prep["lin_b"], out_dtype=jnp.float32)
    return logits[:, :T, :V]                                     # (B, T, num_emb)


transformer_s2s_forward_jit = jax.jit(transformer_s2s_forward, static_argnames=("nhead",))


# --------------------------------- parameters -------------------------------- #

def make_pe(max_len, d_model):
    position = np.arange(max_len, dtype=np.float32)[:, None]
    div_term = np.exp(np.arange(0, d_model, 2, dtype=np.float32)
                      * (-math.log(10000.0) / d_model))
    pe = np.zeros((max_len, d_model), np.float32)
    pe[:, 0::2] = np.sin(position * div_term)
    pe[:, 1::2] = np.cos(position * div_term)
    return jnp.asarray(pe)


def init_params(key, num_emb, emb_dim, nhead, ff_dim, n_enc, n_dec, max_len=512):
    """Raw parameters in torch nn.Linear / nn.MultiheadAttention layout (f32)."""
    keys = iter(jax.random.split(key, 1024))

    def w(shape, scale=0.02):
        return jax.random.normal(next(keys), shape, jnp.float32) * scale

    def mha():
        return {
            "in_proj_weight": w((3 * emb_dim, emb_dim)),
            "in_proj_bias": w((3 * emb_dim,)),
            "out_proj_weight": w((emb_dim, emb_dim)),
            "out_proj_bias": w((emb_dim,)),
        }

    def enc_layer():
        return {
            "self_attn": mha(),
            "linear1_w": w((ff_dim, emb_dim)), "linear1_b": w((ff_dim,)),
            "linear2_w": w((emb_dim, ff_dim)), "linear2_b": w((emb_dim,)),
            "norm1_w": jnp.ones((emb_dim,), jnp.float32), "norm1_b": jnp.zeros((emb_dim,), jnp.float32),
            "norm2_w": jnp.ones((emb_dim,), jnp.float32), "norm2_b": jnp.zeros((emb_dim,), jnp.float32),
        }

    def dec_layer():
        d = enc_layer()
        d["cross_attn"] = mha()
        d["norm3_w"] = jnp.ones((emb_dim,), jnp.float32)
        d["norm3_b"] = jnp.zeros((emb_dim,), jnp.float32)
        return d

    return {
        "emb": w((num_emb, emb_dim), scale=1.0),
        "pe": make_pe(max_len, emb_dim),
        "enc_layers": [enc_layer() for _ in range(n_enc)],
        "dec_layers": [dec_layer() for _ in range(n_dec)],
        # shared LayerNorm used by both encoder and decoder (as in the module)
        "final_norm_w": jnp.ones((emb_dim,), jnp.float32),
        "final_norm_b": jnp.zeros((emb_dim,), jnp.float32),
        "lin_w": w((num_emb, emb_dim)),
        "lin_b": w((num_emb,)),
    }


def prepare_params(raw, nhead):
    """One-time re-layout: pre-transpose weights, cast matmul weights to bf16,
    fuse QKV / KV projections, fold the 1/sqrt(Dh) scale into q, and pad the
    vocab projection weight/bias ONCE to a lane-dense multiple of 128."""
    E = raw["emb"].shape[1]
    Dh = E // nhead
    scale = 1.0 / math.sqrt(Dh)

    def prep_self(p):
        w, bias = p["in_proj_weight"], p["in_proj_bias"]
        wq, wk, wv = w[:E] * scale, w[E:2 * E], w[2 * E:]
        bq, bk, bv = bias[:E] * scale, bias[E:2 * E], bias[2 * E:]
        return {
            "wqkv_t": jnp.concatenate([wq, wk, wv], axis=0).T.astype(jnp.bfloat16),
            "bqkv": jnp.concatenate([bq, bk, bv]).astype(jnp.float32),
            "wo_t": p["out_proj_weight"].T.astype(jnp.bfloat16),
            "bo": p["out_proj_bias"].astype(jnp.float32),
        }

    def prep_cross(p):
        w, bias = p["in_proj_weight"], p["in_proj_bias"]
        wq, wk, wv = w[:E] * scale, w[E:2 * E], w[2 * E:]
        bq, bk, bv = bias[:E] * scale, bias[E:2 * E], bias[2 * E:]
        return {
            "wq_t": wq.T.astype(jnp.bfloat16),
            "bq": bq.astype(jnp.float32),
            "wkv_t": jnp.concatenate([wk, wv], axis=0).T.astype(jnp.bfloat16),
            "bkv": jnp.concatenate([bk, bv]).astype(jnp.float32),
            "wo_t": p["out_proj_weight"].T.astype(jnp.bfloat16),
            "bo": p["out_proj_bias"].astype(jnp.float32),
        }

    def prep_common(lp, out):
        out["w1_t"] = lp["linear1_w"].T.astype(jnp.bfloat16)
        out["b1"] = lp["linear1_b"].astype(jnp.float32)
        out["w2_t"] = lp["linear2_w"].T.astype(jnp.bfloat16)
        out["b2"] = lp["linear2_b"].astype(jnp.float32)
        for k in ("norm1_w", "norm1_b", "norm2_w", "norm2_b"):
            out[k] = lp[k].astype(jnp.float32)
        return out

    enc_layers = [prep_common(lp, {"sa": prep_self(lp["self_attn"])})
                  for lp in raw["enc_layers"]]
    dec_layers = []
    for lp in raw["dec_layers"]:
        d = prep_common(lp, {"sa": prep_self(lp["self_attn"]),
                             "ca": prep_cross(lp["cross_attn"])})
        d["norm3_w"] = lp["norm3_w"].astype(jnp.float32)
        d["norm3_b"] = lp["norm3_b"].astype(jnp.float32)
        dec_layers.append(d)

    # Pad vocab projection weight/bias once (lane-dense, sliced once at consumer).
    V = raw["lin_w"].shape[0]
    Vp = _round_up(V, 128)
    lin_w_t = _pad_axis(raw["lin_w"].T, 1, Vp).astype(jnp.bfloat16)    # (E, Vp)
    lin_b = _pad_axis(raw["lin_b"], 0, Vp).astype(jnp.float32)         # (Vp,)

    return {
        "emb": raw["emb"].astype(jnp.float32),
        "pe": raw["pe"].astype(jnp.float32),
        "enc_layers": enc_layers,
        "dec_layers": dec_layers,
        "final_norm_w": raw["final_norm_w"].astype(jnp.float32),
        "final_norm_b": raw["final_norm_b"].astype(jnp.float32),
        "lin_w_t": lin_w_t,
        "lin_b": lin_b,
    }


# ------------------------------------ main ----------------------------------- #

if __name__ == "__main__":
    num_emb, emb_dim, nhead, ff_dim = 64, 32, 4, 64
    n_enc, n_dec = 2, 2
    B, S, T = 2, 8, 8

    raw = init_params(jax.random.PRNGKey(0), num_emb, emb_dim, nhead, ff_dim, n_enc, n_dec)
    prep = prepare_params(raw, nhead)

    k1, k2 = jax.random.split(jax.random.PRNGKey(1))
    enc_input = jax.random.randint(k1, (B, S), 0, num_emb, dtype=jnp.int32)
    dec_input = jax.random.randint(k2, (B, T), 0, num_emb, dtype=jnp.int32)
    input_key_mask = jnp.zeros((B, S), bool).at[:, -2:].set(True)    # True = padded
    output_key_mask = jnp.zeros((B, T), bool).at[:, -1:].set(True)   # True = padded
    out_offsets = jnp.arange(T, dtype=jnp.int32)

    logits = transformer_s2s_forward_jit(prep, enc_input, dec_input,
                                         input_key_mask, output_key_mask,
                                         out_offsets, nhead=nhead)
    jax.block_until_ready(logits)

    assert logits.shape == (B, T, num_emb), logits.shape
    assert bool(jnp.all(jnp.isfinite(logits)))
    print("KERNEL_OK")
</pallas_src>

<mosaic_0001>
module attributes {stable_mosaic.version = 11 : i64} {
  func.func @_linear_kernel(%arg0: i32, %arg1: memref<16x32xbf16, #tpu.memory_space<vmem>>, %arg2: memref<32x96xbf16, #tpu.memory_space<vmem>>, %arg3: memref<1x96xf32, #tpu.memory_space<vmem>>, %arg4: memref<16x96xbf16, #tpu.memory_space<vmem>>) attributes {dimension_semantics = [#tpu.dimension_semantics<parallel>], iteration_bounds = array<i64: 1>, scalar_prefetch = 0 : i64, scratch_operands = 0 : i64, tpu.core_type = #tpu.core_type<tc>, window_params = [{transform_indices = @transform_0, window_bounds = array<i64: 16, 32>}, {pipeline_mode = #tpu.pipeline_mode<synchronous>, transform_indices = @transform_1, window_bounds = array<i64: 32, 96>}, {pipeline_mode = #tpu.pipeline_mode<synchronous>, transform_indices = @transform_2, window_bounds = array<i64: 1, 96>}, {transform_indices = @transform_3, window_bounds = array<i64: 16, 96>}]} {
    %c0 = arith.constant 0 : index
    %c0_0 = arith.constant 0 : index
    %0 = vector.load %arg1[%c0, %c0_0] : memref<16x32xbf16, #tpu.memory_space<vmem>>, vector<16x32xbf16>
    %c0_1 = arith.constant 0 : index
    %c0_2 = arith.constant 0 : index
    %1 = vector.load %arg2[%c0_1, %c0_2] : memref<32x96xbf16, #tpu.memory_space<vmem>>, vector<32x96xbf16>
    %cst = arith.constant dense<0.000000e+00> : vector<16x96xf32>
    %2 = tpu.matmul %0, %1, %cst {dimension_numbers = #tpu.dot_dimension_numbers<[1], [0], [0], [1], [0, 0, 1, 1], [], []>} : vector<16x32xbf16>, vector<32x96xbf16>, vector<16x96xf32> -> vector<16x96xf32>
    %c0_3 = arith.constant 0 : index
    %c0_4 = arith.constant 0 : index
    %3 = vector.load %arg3[%c0_3, %c0_4] : memref<1x96xf32, #tpu.memory_space<vmem>>, vector<1x96xf32>
    %4 = vector.broadcast %3 : vector<1x96xf32> to vector<16x96xf32>
    %5 = arith.addf %2, %4 : vector<16x96xf32>
    %6 = arith.truncf %5 : vector<16x96xf32> to vector<16x96xbf16>
    %c0_5 = arith.constant 0 : index
    %c0_6 = arith.constant 0 : index
    %7 = vector.load %arg4[%c0_5, %c0_6] : memref<16x96xbf16, #tpu.memory_space<vmem>>, vector<16x96xbf16>
    tpu.vector_store %arg4[%c0_5, %c0_6], %6 {strides = array<i32>} : memref<16x96xbf16, #tpu.memory_space<vmem>>, vector<16x96xbf16>,
    return
  }
  func.func @transform_0(%arg0: i32) -> (i32, i32) {
    %c0_i32 = arith.constant 0 : i32
    %c0_i32_0 = arith.constant 0 : i32
    return %arg0, %c0_i32 : i32, i32
  }
  func.func @transform_1(%arg0: i32) -> (i32, i32) {
    %c0_i32 = arith.constant 0 : i32
    %c0_i32_0 = arith.constant 0 : i32
    %c0_i32_1 = arith.constant 0 : i32
    return %c0_i32, %c0_i32_0 : i32, i32
  }
  func.func @transform_2(%arg0: i32) -> (i32, i32) {
    %c0_i32 = arith.constant 0 : i32
    %c0_i32_0 = arith.constant 0 : i32
    %c0_i32_1 = arith.constant 0 : i32
    return %c0_i32, %c0_i32_0 : i32, i32
  }
  func.func @transform_3(%arg0: i32) -> (i32, i32) {
    %c0_i32 = arith.constant 0 : i32
    %c0_i32_0 = arith.constant 0 : i32
    return %arg0, %c0_i32 : i32, i32
  }
}

module attributes {stable_mosaic.version = 11 : i64} {
  func.func @_attn_kernel(%arg0: i32, %arg1: memref<1x4x8x8xbf16, #tpu.memory_space<vmem>>, %arg2: memref<1x4x8x8xbf16, #tpu.memory_space<vmem>>, %arg3: memref<1x4x8x8xbf16, #tpu.memory_space<vmem>>, %arg4: memref<1x1x8xf32, #tpu.memory_space<vmem>>, %arg5: memref<1x4x8x8xbf16, #tpu.memory_space<vmem>>) attributes {dimension_semantics = [#tpu.dimension_semantics<parallel>], iteration_bounds = array<i64: 2>, scalar_prefetch = 0 : i64, scratch_operands = 0 : i64, tpu.core_type = #tpu.core_type<tc>, window_params = [{transform_indices = @transform_0, window_bounds = array<i64: 1, 4, 8, 8>}, {transform_indices = @transform_1, window_bounds = array<i64: 1, 4, 8, 8>}, {transform_indices = @transform_2, window_bounds = array<i64: 1, 4, 8, 8>}, {transform_indices = @transform_3, window_bounds = array<i64: 1, 1, 8>}, {transform_indices = @transform_4, window_bounds = array<i64: 1, 4, 8, 8>}]} {
    %c0 = arith.constant 0 : index
    %c0_0 = arith.constant 0 : index
    %c0_1 = arith.constant 0 : index
    %c0_2 = arith.constant 0 : index
    %0 = vector.load %arg1[%c0, %c0_0, %c0_1, %c0_2] : memref<1x4x8x8xbf16, #tpu.memory_space<vmem>>, vector<1x4x8x8xbf16>
    %1 = vector.shape_cast %0 : vector<1x4x8x8xbf16> to vector<4x8x8xbf16>
    %c0_3 = arith.constant 0 : index
    %c0_4 = arith.constant 0 : index
    %c0_5 = arith.constant 0 : index
    %c0_6 = arith.constant 0 : index
    %2 = vector.load %arg2[%c0_3, %c0_4, %c0_5, %c0_6] : memref<1x4x8x8xbf16, #tpu.memory_space<vmem>>, vector<1x4x8x8xbf16>
    %3 = vector.shape_cast %2 : vector<1x4x8x8xbf16> to vector<4x8x8xbf16>
    %c0_7 = arith.constant 0 : index
    %c0_8 = arith.constant 0 : index
    %c0_9 = arith.constant 0 : index
    %c0_10 = arith.constant 0 : index
    %4 = vector.load %arg3[%c0_7, %c0_8, %c0_9, %c0_10] : memref<1x4x8x8xbf16, #tpu.memory_space<vmem>>, vector<1x4x8x8xbf16>
    %5 = vector.shape_cast %4 : vector<1x4x8x8xbf16> to vector<4x8x8xbf16>
    "tpu.trace_start"() <{level = 10 : i32, message = "hqd,hkd->hqk"}> : () -> ()
    %cst = arith.constant dense<0.000000e+00> : vector<4x8x8xf32>
    %6 = tpu.matmul %1, %3, %cst {dimension_numbers = #tpu.dot_dimension_numbers<[2], [2], [1], [1], [0, 0, 0, 1, 1, 1], [0], [0]>} : vector<4x8x8xbf16>, vector<4x8x8xbf16>, vector<4x8x8xf32> -> vector<4x8x8xf32>
    "tpu.trace_stop"() : () -> ()
    %c0_11 = arith.constant 0 : index
    %c0_12 = arith.constant 0 : index
    %c0_13 = arith.constant 0 : index
    %7 = vector.load %arg4[%c0_11, %c0_12, %c0_13] : memref<1x1x8xf32, #tpu.memory_space<vmem>>, vector<1x1x8xf32>
    %8 = vector.broadcast %7 : vector<1x1x8xf32> to vector<4x8x8xf32>
    %9 = arith.addf %6, %8 : vector<4x8x8xf32>
    %10 = tpu.iota {dimensions = array<i32: 1>} : vector<4x8x8xi32>
    %11 = tpu.iota {dimensions = array<i32: 2>} : vector<4x8x8xi32>
    %12 = arith.cmpi sgt, %11, %10 : vector<4x8x8xi32>
    %cst_14 = arith.constant -1.000000e+30 : f32
    %13 = vector.broadcast %cst_14 : f32 to vector<4x8x8xf32>
    %14 = arith.select %12, %13, %9 : vector<4x8x8xi1>, vector<4x8x8xf32>
    %cst_15 = arith.constant dense<0xFF800000> : vector<4x8xf32>
    %15 = vector.multi_reduction <maximumf>, %14, %cst_15 [2] : vector<4x8x8xf32> to vector<4x8xf32>
    %16 = vector.shape_cast %15 : vector<4x8xf32> to vector<4x8x1xf32>
    %17 = vector.broadcast %16 : vector<4x8x1xf32> to vector<4x8x8xf32>
    %18 = arith.subf %14, %17 : vector<4x8x8xf32>
    %19 = math.exp %18 : vector<4x8x8xf32>
    %cst_16 = arith.constant dense<0.000000e+00> : vector<4x8xf32>
    %20 = vector.multi_reduction <add>, %19, %cst_16 [2] : vector<4x8x8xf32> to vector<4x8xf32>
    %21 = vector.shape_cast %20 : vector<4x8xf32> to vector<4x8x1xf32>
    %22 = tpu.reciprocal %21 {approx = true} : vector<4x8x1xf32> -> vector<4x8x1xf32>
    %23 = vector.broadcast %22 : vector<4x8x1xf32> to vector<4x8x8xf32>
    %24 = arith.mulf %19, %23 : vector<4x8x8xf32>
    %25 = arith.truncf %24 : vector<4x8x8xf32> to vector<4x8x8xbf16>
    "tpu.trace_start"() <{level = 10 : i32, message = "hqk,hkd->hqd"}> : () -> ()
    %cst_17 = arith.constant dense<0.000000e+00> : vector<4x8x8xf32>
    %26 = tpu.matmul %25, %5, %cst_17 {dimension_numbers = #tpu.dot_dimension_numbers<[2], [1], [1], [2], [0, 0, 0, 1, 1, 2], [0], [0]>} : vector<4x8x8xbf16>, vector<4x8x8xbf16>, vector<4x8x8xf32> -> vector<4x8x8xf32>
    "tpu.trace_stop"() : () -> ()
    %27 = arith.truncf %26 : vector<4x8x8xf32> to vector<4x8x8xbf16>
    %c0_18 = arith.constant 0 : index
    %c0_19 = arith.constant 0 : index
    %c0_20 = arith.constant 0 : index
    %c0_21 = arith.constant 0 : index
    %28 = vector.load %arg5[%c0_18, %c0_19, %c0_20, %c0_21] : memref<1x4x8x8xbf16, #tpu.memory_space<vmem>>, vector<1x4x8x8xbf16>
    %29 = vector.shape_cast %28 : vector<1x4x8x8xbf16> to vector<4x8x8xbf16>
    %30 = vector.shape_cast %27 : vector<4x8x8xbf16> to vector<1x4x8x8xbf16>
    tpu.vector_store %arg5[%c0_18, %c0_19, %c0_20, %c0_21], %30 {strides = array<i32>} : memref<1x4x8x8xbf16, #tpu.memory_space<vmem>>, vector<1x4x8x8xbf16>,
    return
  }
  func.func @transform_0(%arg0: i32) -> (i32, i32, i32, i32) {
    %c0_i32 = arith.constant 0 : i32
    %c0_i32_0 = arith.constant 0 : i32
    %c0_i32_1 = arith.constant 0 : i32
    %c0_i32_2 = arith.constant 0 : i32
    return %arg0, %c0_i32, %c0_i32_0, %c0_i32_1 : i32, i32, i32, i32
  }
  func.func @transform_1(%arg0: i32) -> (i32, i32, i32, i32) {
    %c0_i32 = arith.constant 0 : i32
    %c0_i32_0 = arith.constant 0 : i32
    %c0_i32_1 = arith.constant 0 : i32
    %c0_i32_2 = arith.constant 0 : i32
    return %arg0, %c0_i32, %c0_i32_0, %c0_i32_1 : i32, i32, i32, i32
  }
  func.func @transform_2(%arg0: i32) -> (i32, i32, i32, i32) {
    %c0_i32 = arith.constant 0 : i32
    %c0_i32_0 = arith.constant 0 : i32
    %c0_i32_1 = arith.constant 0 : i32
    %c0_i32_2 = arith.constant 0 : i32
    return %arg0, %c0_i32, %c0_i32_0, %c0_i32_1 : i32, i32, i32, i32
  }
  func.func @transform_3(%arg0: i32) -> (i32, i32, i32) {
    %c0_i32 = arith.constant 0 : i32
    %c0_i32_0 = arith.constant 0 : i32
    %c0_i32_1 = arith.constant 0 : i32
    return %arg0, %c0_i32, %c0_i32_0 : i32, i32, i32
  }
  func.func @transform_4(%arg0: i32) -> (i32, i32, i32, i32) {
    %c0_i32 = arith.constant 0 : i32
    %c0_i32_0 = arith.constant 0 : i32
    %c0_i32_1 = arith.constant 0 : i32
    %c0_i32_2 = arith.constant 0 : i32
    return %arg0, %c0_i32, %c0_i32_0, %c0_i32_1 : i32, i32, i32, i32
  }
}

module attributes {stable_mosaic.version = 11 : i64} {
  func.func @_linear_add_ln_kernel(%arg0: i32, %arg1: memref<16x32xbf16, #tpu.memory_space<vmem>>, %arg2: memref<16x32xbf16, #tpu.memory_space<vmem>>, %arg3: memref<32x32xbf16, #tpu.memory_space<vmem>>, %arg4: memref<1x32xf32, #tpu.memory_space<vmem>>, %arg5: memref<1x32xf32, #tpu.memory_space<vmem>>, %arg6: memref<1x32xf32, #tpu.memory_space<vmem>>, %arg7: memref<16x32xbf16, #tpu.memory_space<vmem>>) attributes {dimension_semantics = [#tpu.dimension_semantics<parallel>], iteration_bounds = array<i64: 1>, scalar_prefetch = 0 : i64, scratch_operands = 0 : i64, tpu.core_type = #tpu.core_type<tc>, window_params = [{transform_indices = @transform_0, window_bounds = array<i64: 16, 32>}, {transform_indices = @transform_1, window_bounds = array<i64: 16, 32>}, {pipeline_mode = #tpu.pipeline_mode<synchronous>, transform_indices = @transform_2, window_bounds = array<i64: 32, 32>}, {pipeline_mode = #tpu.pipeline_mode<synchronous>, transform_indices = @transform_3, window_bounds = array<i64: 1, 32>}, {pipeline_mode = #tpu.pipeline_mode<synchronous>, transform_indices = @transform_4, window_bounds = array<i64: 1, 32>}, {pipeline_mode = #tpu.pipeline_mode<synchronous>, transform_indices = @transform_5, window_bounds = array<i64: 1, 32>}, {transform_indices = @transform_6, window_bounds = array<i64: 16, 32>}]} {
    %c0 = arith.constant 0 : index
    %c0_0 = arith.constant 0 : index
    %0 = vector.load %arg1[%c0, %c0_0] : memref<16x32xbf16, #tpu.memory_space<vmem>>, vector<16x32xbf16>
    %c0_1 = arith.constant 0 : index
    %c0_2 = arith.constant 0 : index
    %1 = vector.load %arg3[%c0_1, %c0_2] : memref<32x32xbf16, #tpu.memory_space<vmem>>, vector<32x32xbf16>
    %cst = arith.constant dense<0.000000e+00> : vector<16x32xf32>
    %2 = tpu.matmul %0, %1, %cst {dimension_numbers = #tpu.dot_dimension_numbers<[1], [0], [0], [1], [0, 0, 1, 1], [], []>} : vector<16x32xbf16>, vector<32x32xbf16>, vector<16x32xf32> -> vector<16x32xf32>
    %c0_3 = arith.constant 0 : index
    %c0_4 = arith.constant 0 : index
    %3 = vector.load %arg4[%c0_3, %c0_4] : memref<1x32xf32, #tpu.memory_space<vmem>>, vector<1x32xf32>
    %4 = vector.broadcast %3 : vector<1x32xf32> to vector<16x32xf32>
    %5 = arith.addf %2, %4 : vector<16x32xf32>
    %c0_5 = arith.constant 0 : index
    %c0_6 = arith.constant 0 : index
    %6 = vector.load %arg2[%c0_5, %c0_6] : memref<16x32xbf16, #tpu.memory_space<vmem>>, vector<16x32xbf16>
    %7 = arith.extf %6 : vector<16x32xbf16> to vector<16x32xf32>
    %8 = arith.addf %5, %7 : vector<16x32xf32>
    %cst_7 = arith.constant dense<0.000000e+00> : vector<16xf32>
    %9 = vector.multi_reduction <add>, %8, %cst_7 [1] : vector<16x32xf32> to vector<16xf32>
    %10 = vector.shape_cast %9 : vector<16xf32> to vector<16x1xf32>
    %cst_8 = arith.constant 3.200000e+01 : f32
    %11 = vector.broadcast %cst_8 : f32 to vector<16x1xf32>
    %12 = arith.divf %10, %11 : vector<16x1xf32>
    %13 = vector.broadcast %12 : vector<16x1xf32> to vector<16x32xf32>
    %14 = arith.subf %8, %13 : vector<16x32xf32>
    %15 = arith.mulf %14, %14 : vector<16x32xf32>
    %cst_9 = arith.constant dense<0.000000e+00> : vector<16xf32>
    %16 = vector.multi_reduction <add>, %15, %cst_9 [1] : vector<16x32xf32> to vector<16xf32>
    %17 = vector.shape_cast %16 : vector<16xf32> to vector<16x1xf32>
    %cst_10 = arith.constant 3.200000e+01 : f32
    %18 = vector.broadcast %cst_10 : f32 to vector<16x1xf32>
    %19 = arith.divf %17, %18 : vector<16x1xf32>
    %cst_11 = arith.constant 9.99999974E-6 : f32
    %20 = vector.broadcast %cst_11 : f32 to vector<16x1xf32>
    %21 = arith.addf %19, %20 : vector<16x1xf32>
    %22 = math.rsqrt %21 : vector<16x1xf32>
    %23 = vector.broadcast %22 : vector<16x1xf32> to vector<16x32xf32>
    %24 = arith.mulf %14, %23 : vector<16x32xf32>
    %c0_12 = arith.constant 0 : index
    %c0_13 = arith.constant 0 : index
    %25 = vector.load %arg5[%c0_12, %c0_13] : memref<1x32xf32, #tpu.memory_space<vmem>>, vector<1x32xf32>
    %26 = vector.broadcast %25 : vector<1x32xf32> to vector<16x32xf32>
    %27 = arith.mulf %24, %26 : vector<16x32xf32>
    %c0_14 = arith.constant 0 : index
    %c0_15 = arith.constant 0 : index
    %28 = vector.load %arg6[%c0_14, %c0_15] : memref<1x32xf32, #tpu.memory_space<vmem>>, vector<1x32xf32>
    %29 = vector.broadcast %28 : vector<1x32xf32> to vector<16x32xf32>
    %30 = arith.addf %27, %29 : vector<16x32xf32>
    %31 = arith.truncf %30 : vector<16x32xf32> to vector<16x32xbf16>
    %c0_16 = arith.constant 0 : index
    %c0_17 = arith.constant 0 : index
    %32 = vector.load %arg7[%c0_16, %c0_17] : memref<16x32xbf16, #tpu.memory_space<vmem>>, vector<16x32xbf16>
    tpu.vector_store %arg7[%c0_16, %c0_17], %31 {strides = array<i32>} : memref<16x32xbf16, #tpu.memory_space<vmem>>, vector<16x32xbf16>,
    return
  }
  func.func @transform_0(%arg0: i32) -> (i32, i32) {
    %c0_i32 = arith.constant 0 : i32
    %c0_i32_0 = arith.constant 0 : i32
    return %arg0, %c0_i32 : i32, i32
  }
  func.func @transform_1(%arg0: i32) -> (i32, i32) {
    %c0_i32 = arith.constant 0 : i32
    %c0_i32_0 = arith.constant 0 : i32
    return %arg0, %c0_i32 : i32, i32
  }
  func.func @transform_2(%arg0: i32) -> (i32, i32) {
    %c0_i32 = arith.constant 0 : i32
    %c0_i32_0 = arith.constant 0 : i32
    %c0_i32_1 = arith.constant 0 : i32
    return %c0_i32, %c0_i32_0 : i32, i32
  }
  func.func @transform_3(%arg0: i32) -> (i32, i32) {
    %c0_i32 = arith.constant 0 : i32
    %c0_i32_0 = arith.constant 0 : i32
    %c0_i32_1 = arith.constant 0 : i32
    return %c0_i32, %c0_i32_0 : i32, i32
  }
  func.func @transform_4(%arg0: i32) -> (i32, i32) {
    %c0_i32 = arith.constant 0 : i32
    %c0_i32_0 = arith.constant 0 : i32
    %c0_i32_1 = arith.constant 0 : i32
    return %c0_i32, %c0_i32_0 : i32, i32
  }
  func.func @transform_5(%arg0: i32) -> (i32, i32) {
    %c0_i32 = arith.constant 0 : i32
    %c0_i32_0 = arith.constant 0 : i32
    %c0_i32_1 = arith.constant 0 : i32
    return %c0_i32, %c0_i32_0 : i32, i32
  }
  func.func @transform_6(%arg0: i32) -> (i32, i32) {
    %c0_i32 = arith.constant 0 : i32
    %c0_i32_0 = arith.constant 0 : i32
    return %arg0, %c0_i32 : i32, i32
  }
}

module attributes {stable_mosaic.version = 11 : i64} {
  func.func @_linear_kernel(%arg0: i32, %arg1: memref<16x32xbf16, #tpu.memory_space<vmem>>, %arg2: memref<32x32xbf16, #tpu.memory_space<vmem>>, %arg3: memref<1x32xf32, #tpu.memory_space<vmem>>, %arg4: memref<16x32xbf16, #tpu.memory_space<vmem>>) attributes {dimension_semantics = [#tpu.dimension_semantics<parallel>], iteration_bounds = array<i64: 1>, scalar_prefetch = 0 : i64, scratch_operands = 0 : i64, tpu.core_type = #tpu.core_type<tc>, window_params = [{transform_indices = @transform_0, window_bounds = array<i64: 16, 32>}, {pipeline_mode = #tpu.pipeline_mode<synchronous>, transform_indices = @transform_1, window_bounds = array<i64: 32, 32>}, {pipeline_mode = #tpu.pipeline_mode<synchronous>, transform_indices = @transform_2, window_bounds = array<i64: 1, 32>}, {transform_indices = @transform_3, window_bounds = array<i64: 16, 32>}]} {
    %c0 = arith.constant 0 : index
    %c0_0 = arith.constant 0 : index
    %0 = vector.load %arg1[%c0, %c0_0] : memref<16x32xbf16, #tpu.memory_space<vmem>>, vector<16x32xbf16>
    %c0_1 = arith.constant 0 : index
    %c0_2 = arith.constant 0 : index
    %1 = vector.load %arg2[%c0_1, %c0_2] : memref<32x32xbf16, #tpu.memory_space<vmem>>, vector<32x32xbf16>
    %cst = arith.constant dense<0.000000e+00> : vector<16x32xf32>
    %2 = tpu.matmul %0, %1, %cst {dimension_numbers = #tpu.dot_dimension_numbers<[1], [0], [0], [1], [0, 0, 1, 1], [], []>} : vector<16x32xbf16>, vector<32x32xbf16>, vector<16x32xf32> -> vector<16x32xf32>
    %c0_3 = arith.constant 0 : index
    %c0_4 = arith.constant 0 : index
    %3 = vector.load %arg3[%c0_3, %c0_4] : memref<1x32xf32, #tpu.memory_space<vmem>>, vector<1x32xf32>
    %4 = vector.broadcast %3 : vector<1x32xf32> to vector<16x32xf32>
    %5 = arith.addf %2, %4 : vector<16x32xf32>
    %6 = arith.truncf %5 : vector<16x32xf32> to vector<16x32xbf16>
    %c0_5 = arith.constant 0 : index
    %c0_6 = arith.constant 0 : index
    %7 = vector.load %arg4[%c0_5, %c0_6] : memref<16x32xbf16, #tpu.memory_space<vmem>>, vector<16x32xbf16>
    tpu.vector_store %arg4[%c0_5, %c0_6], %6 {strides = array<i32>} : memref<16x32xbf16, #tpu.memory_space<vmem>>, vector<16x32xbf16>,
    return
  }
  func.func @transform_0(%arg0: i32) -> (i32, i32) {
    %c0_i32 = arith.constant 0 : i32
    %c0_i32_0 = arith.constant 0 : i32
    return %arg0, %c0_i32 : i32, i32
  }
  func.func @transform_1(%arg0: i32) -> (i32, i32) {
    %c0_i32 = arith.constant 0 : i32
    %c0_i32_0 = arith.constant 0 : i32
    %c0_i32_1 = arith.constant 0 : i32
    return %c0_i32, %c0_i32_0 : i32, i32
  }
  func.func @transform_2(%arg0: i32) -> (i32, i32) {
    %c0_i32 = arith.constant 0 : i32
    %c0_i32_0 = arith.constant 0 : i32
    %c0_i32_1 = arith.constant 0 : i32
    return %c0_i32, %c0_i32_0 : i32, i32
  }
  func.func @transform_3(%arg0: i32) -> (i32, i32) {
    %c0_i32 = arith.constant 0 : i32
    %c0_i32_0 = arith.constant 0 : i32
    return %arg0, %c0_i32 : i32, i32
  }
}

module attributes {stable_mosaic.version = 11 : i64} {
  func.func @_attn_kernel(%arg0: i32, %arg1: memref<1x4x8x8xbf16, #tpu.memory_space<vmem>>, %arg2: memref<1x4x8x8xbf16, #tpu.memory_space<vmem>>, %arg3: memref<1x4x8x8xbf16, #tpu.memory_space<vmem>>, %arg4: memref<1x1x8xf32, #tpu.memory_space<vmem>>, %arg5: memref<1x4x8x8xbf16, #tpu.memory_space<vmem>>) attributes {dimension_semantics = [#tpu.dimension_semantics<parallel>], iteration_bounds = array<i64: 2>, scalar_prefetch = 0 : i64, scratch_operands = 0 : i64, tpu.core_type = #tpu.core_type<tc>, window_params = [{transform_indices = @transform_0, window_bounds = array<i64: 1, 4, 8, 8>}, {transform_indices = @transform_1, window_bounds = array<i64: 1, 4, 8, 8>}, {transform_indices = @transform_2, window_bounds = array<i64: 1, 4, 8, 8>}, {transform_indices = @transform_3, window_bounds = array<i64: 1, 1, 8>}, {transform_indices = @transform_4, window_bounds = array<i64: 1, 4, 8, 8>}]} {
    %c0 = arith.constant 0 : index
    %c0_0 = arith.constant 0 : index
    %c0_1 = arith.constant 0 : index
    %c0_2 = arith.constant 0 : index
    %0 = vector.load %arg1[%c0, %c0_0, %c0_1, %c0_2] : memref<1x4x8x8xbf16, #tpu.memory_space<vmem>>, vector<1x4x8x8xbf16>
    %1 = vector.shape_cast %0 : vector<1x4x8x8xbf16> to vector<4x8x8xbf16>
    %c0_3 = arith.constant 0 : index
    %c0_4 = arith.constant 0 : index
    %c0_5 = arith.constant 0 : index
    %c0_6 = arith.constant 0 : index
    %2 = vector.load %arg2[%c0_3, %c0_4, %c0_5, %c0_6] : memref<1x4x8x8xbf16, #tpu.memory_space<vmem>>, vector<1x4x8x8xbf16>
    %3 = vector.shape_cast %2 : vector<1x4x8x8xbf16> to vector<4x8x8xbf16>
    %c0_7 = arith.constant 0 : index
    %c0_8 = arith.constant 0 : index
    %c0_9 = arith.constant 0 : index
    %c0_10 = arith.constant 0 : index
    %4 = vector.load %arg3[%c0_7, %c0_8, %c0_9, %c0_10] : memref<1x4x8x8xbf16, #tpu.memory_space<vmem>>, vector<1x4x8x8xbf16>
    %5 = vector.shape_cast %4 : vector<1x4x8x8xbf16> to vector<4x8x8xbf16>
    "tpu.trace_start"() <{level = 10 : i32, message = "hqd,hkd->hqk"}> : () -> ()
    %cst = arith.constant dense<0.000000e+00> : vector<4x8x8xf32>
    %6 = tpu.matmul %1, %3, %cst {dimension_numbers = #tpu.dot_dimension_numbers<[2], [2], [1], [1], [0, 0, 0, 1, 1, 1], [0], [0]>} : vector<4x8x8xbf16>, vector<4x8x8xbf16>, vector<4x8x8xf32> -> vector<4x8x8xf32>
    "tpu.trace_stop"() : () -> ()
    %c0_11 = arith.constant 0 : index
    %c0_12 = arith.constant 0 : index
    %c0_13 = arith.constant 0 : index
    %7 = vector.load %arg4[%c0_11, %c0_12, %c0_13] : memref<1x1x8xf32, #tpu.memory_space<vmem>>, vector<1x1x8xf32>
    %8 = vector.broadcast %7 : vector<1x1x8xf32> to vector<4x8x8xf32>
    %9 = arith.addf %6, %8 : vector<4x8x8xf32>
    %cst_14 = arith.constant dense<0xFF800000> : vector<4x8xf32>
    %10 = vector.multi_reduction <maximumf>, %9, %cst_14 [2] : vector<4x8x8xf32> to vector<4x8xf32>
    %11 = vector.shape_cast %10 : vector<4x8xf32> to vector<4x8x1xf32>
    %12 = vector.broadcast %11 : vector<4x8x1xf32> to vector<4x8x8xf32>
    %13 = arith.subf %9, %12 : vector<4x8x8xf32>
    %14 = math.exp %13 : vector<4x8x8xf32>
    %cst_15 = arith.constant dense<0.000000e+00> : vector<4x8xf32>
    %15 = vector.multi_reduction <add>, %14, %cst_15 [2] : vector<4x8x8xf32> to vector<4x8xf32>
    %16 = vector.shape_cast %15 : vector<4x8xf32> to vector<4x8x1xf32>
    %17 = tpu.reciprocal %16 {approx = true} : vector<4x8x1xf32> -> vector<4x8x1xf32>
    %18 = vector.broadcast %17 : vector<4x8x1xf32> to vector<4x8x8xf32>
    %19 = arith.mulf %14, %18 : vector<4x8x8xf32>
    %20 = arith.truncf %19 : vector<4x8x8xf32> to vector<4x8x8xbf16>
    "tpu.trace_start"() <{level = 10 : i32, message = "hqk,hkd->hqd"}> : () -> ()
    %cst_16 = arith.constant dense<0.000000e+00> : vector<4x8x8xf32>
    %21 = tpu.matmul %20, %5, %cst_16 {dimension_numbers = #tpu.dot_dimension_numbers<[2], [1], [1], [2], [0, 0, 0, 1, 1, 2], [0], [0]>} : vector<4x8x8xbf16>, vector<4x8x8xbf16>, vector<4x8x8xf32> -> vector<4x8x8xf32>
    "tpu.trace_stop"() : () -> ()
    %22 = arith.truncf %21 : vector<4x8x8xf32> to vector<4x8x8xbf16>
    %c0_17 = arith.constant 0 : index
    %c0_18 = arith.constant 0 : index
    %c0_19 = arith.constant 0 : index
    %c0_20 = arith.constant 0 : index
    %23 = vector.load %arg5[%c0_17, %c0_18, %c0_19, %c0_20] : memref<1x4x8x8xbf16, #tpu.memory_space<vmem>>, vector<1x4x8x8xbf16>
    %24 = vector.shape_cast %23 : vector<1x4x8x8xbf16> to vector<4x8x8xbf16>
    %25 = vector.shape_cast %22 : vector<4x8x8xbf16> to vector<1x4x8x8xbf16>
    tpu.vector_store %arg5[%c0_17, %c0_18, %c0_19, %c0_20], %25 {strides = array<i32>} : memref<1x4x8x8xbf16, #tpu.memory_space<vmem>>, vector<1x4x8x8xbf16>,
    return
  }
  func.func @transform_0(%arg0: i32) -> (i32, i32, i32, i32) {
    %c0_i32 = arith.constant 0 : i32
    %c0_i32_0 = arith.constant 0 : i32
    %c0_i32_1 = arith.constant 0 : i32
    %c0_i32_2 = arith.constant 0 : i32
    return %arg0, %c0_i32, %c0_i32_0, %c0_i32_1 : i32, i32, i32, i32
  }
  func.func @transform_1(%arg0: i32) -> (i32, i32, i32, i32) {
    %c0_i32 = arith.constant 0 : i32
    %c0_i32_0 = arith.constant 0 : i32
    %c0_i32_1 = arith.constant 0 : i32
    %c0_i32_2 = arith.constant 0 : i32
    return %arg0, %c0_i32, %c0_i32_0, %c0_i32_1 : i32, i32, i32, i32
  }
  func.func @transform_2(%arg0: i32) -> (i32, i32, i32, i32) {
    %c0_i32 = arith.constant 0 : i32
    %c0_i32_0 = arith.constant 0 : i32
    %c0_i32_1 = arith.constant 0 : i32
    %c0_i32_2 = arith.constant 0 : i32
    return %arg0, %c0_i32, %c0_i32_0, %c0_i32_1 : i32, i32, i32, i32
  }
  func.func @transform_3(%arg0: i32) -> (i32, i32, i32) {
    %c0_i32 = arith.constant 0 : i32
    %c0_i32_0 = arith.constant 0 : i32
    %c0_i32_1 = arith.constant 0 : i32
    return %arg0, %c0_i32, %c0_i32_0 : i32, i32, i32
  }
  func.func @transform_4(%arg0: i32) -> (i32, i32, i32, i32) {
    %c0_i32 = arith.constant 0 : i32
    %c0_i32_0 = arith.constant 0 : i32
    %c0_i32_1 = arith.constant 0 : i32
    %c0_i32_2 = arith.constant 0 : i32
    return %arg0, %c0_i32, %c0_i32_0, %c0_i32_1 : i32, i32, i32, i32
  }
}

module attributes {stable_mosaic.version = 11 : i64} {
  func.func @_ffn_res_ln_kernel(%arg0: i32, %arg1: memref<16x32xbf16, #tpu.memory_space<vmem>>, %arg2: memref<32x64xbf16, #tpu.memory_space<vmem>>, %arg3: memref<1x64xf32, #tpu.memory_space<vmem>>, %arg4: memref<64x32xbf16, #tpu.memory_space<vmem>>, %arg5: memref<1x32xf32, #tpu.memory_space<vmem>>, %arg6: memref<1x32xf32, #tpu.memory_space<vmem>>, %arg7: memref<1x32xf32, #tpu.memory_space<vmem>>, %arg8: memref<16x32xbf16, #tpu.memory_space<vmem>>) attributes {dimension_semantics = [#tpu.dimension_semantics<parallel>], iteration_bounds = array<i64: 1>, scalar_prefetch = 0 : i64, scratch_operands = 0 : i64, tpu.core_type = #tpu.core_type<tc>, window_params = [{transform_indices = @transform_0, window_bounds = array<i64: 16, 32>}, {pipeline_mode = #tpu.pipeline_mode<synchronous>, transform_indices = @transform_1, window_bounds = array<i64: 32, 64>}, {pipeline_mode = #tpu.pipeline_mode<synchronous>, transform_indices = @transform_2, window_bounds = array<i64: 1, 64>}, {pipeline_mode = #tpu.pipeline_mode<synchronous>, transform_indices = @transform_3, window_bounds = array<i64: 64, 32>}, {pipeline_mode = #tpu.pipeline_mode<synchronous>, transform_indices = @transform_4, window_bounds = array<i64: 1, 32>}, {pipeline_mode = #tpu.pipeline_mode<synchronous>, transform_indices = @transform_5, window_bounds = array<i64: 1, 32>}, {pipeline_mode = #tpu.pipeline_mode<synchronous>, transform_indices = @transform_6, window_bounds = array<i64: 1, 32>}, {transform_indices = @transform_7, window_bounds = array<i64: 16, 32>}]} {
    %c0 = arith.constant 0 : index
    %c0_0 = arith.constant 0 : index
    %0 = vector.load %arg1[%c0, %c0_0] : memref<16x32xbf16, #tpu.memory_space<vmem>>, vector<16x32xbf16>
    %1 = arith.extf %0 : vector<16x32xbf16> to vector<16x32xf32>
    %c0_1 = arith.constant 0 : index
    %c0_2 = arith.constant 0 : index
    %2 = vector.load %arg5[%c0_1, %c0_2] : memref<1x32xf32, #tpu.memory_space<vmem>>, vector<1x32xf32>
    %3 = vector.broadcast %2 : vector<1x32xf32> to vector<16x32xf32>
    %4 = arith.addf %1, %3 : vector<16x32xf32>
    %c0_3 = arith.constant 0 : index
    %c0_4 = arith.constant 0 : index
    %5 = vector.load %arg2[%c0_3, %c0_4] : memref<32x64xbf16, #tpu.memory_space<vmem>>, vector<32x64xbf16>
    %cst = arith.constant dense<0.000000e+00> : vector<16x64xf32>
    %6 = tpu.matmul %0, %5, %cst {dimension_numbers = #tpu.dot_dimension_numbers<[1], [0], [0], [1], [0, 0, 1, 1], [], []>} : vector<16x32xbf16>, vector<32x64xbf16>, vector<16x64xf32> -> vector<16x64xf32>
    %c0_5 = arith.constant 0 : index
    %c0_6 = arith.constant 0 : index
    %7 = vector.load %arg3[%c0_5, %c0_6] : memref<1x64xf32, #tpu.memory_space<vmem>>, vector<1x64xf32>
    %8 = vector.broadcast %7 : vector<1x64xf32> to vector<16x64xf32>
    %9 = arith.addf %6, %8 : vector<16x64xf32>
    %cst_7 = arith.constant 0.000000e+00 : f32
    %10 = vector.broadcast %cst_7 : f32 to vector<16x64xf32>
    %11 = arith.maximumf %9, %10 : vector<16x64xf32>
    %12 = arith.truncf %11 : vector<16x64xf32> to vector<16x64xbf16>
    %c0_8 = arith.constant 0 : index
    %c0_9 = arith.constant 0 : index
    %13 = vector.load %arg4[%c0_8, %c0_9] : memref<64x32xbf16, #tpu.memory_space<vmem>>, vector<64x32xbf16>
    %cst_10 = arith.constant dense<0.000000e+00> : vector<16x32xf32>
    %14 = tpu.matmul %12, %13, %cst_10 {dimension_numbers = #tpu.dot_dimension_numbers<[1], [0], [0], [1], [0, 0, 1, 1], [], []>} : vector<16x64xbf16>, vector<64x32xbf16>, vector<16x32xf32> -> vector<16x32xf32>
    %15 = arith.addf %4, %14 : vector<16x32xf32>
    %cst_11 = arith.constant dense<0.000000e+00> : vector<16xf32>
    %16 = vector.multi_reduction <add>, %15, %cst_11 [1] : vector<16x32xf32> to vector<16xf32>
    %17 = vector.shape_cast %16 : vector<16xf32> to vector<16x1xf32>
    %cst_12 = arith.constant 3.200000e+01 : f32
    %18 = vector.broadcast %cst_12 : f32 to vector<16x1xf32>
    %19 = arith.divf %17, %18 : vector<16x1xf32>
    %20 = vector.broadcast %19 : vector<16x1xf32> to vector<16x32xf32>
    %21 = arith.subf %15, %20 : vector<16x32xf32>
    %22 = arith.mulf %21, %21 : vector<16x32xf32>
    %cst_13 = arith.constant dense<0.000000e+00> : vector<16xf32>
    %23 = vector.multi_reduction <add>, %22, %cst_13 [1] : vector<16x32xf32> to vector<16xf32>
    %24 = vector.shape_cast %23 : vector<16xf32> to vector<16x1xf32>
    %cst_14 = arith.constant 3.200000e+01 : f32
    %25 = vector.broadcast %cst_14 : f32 to vector<16x1xf32>
    %26 = arith.divf %24, %25 : vector<16x1xf32>
    %cst_15 = arith.constant 9.99999974E-6 : f32
    %27 = vector.broadcast %cst_15 : f32 to vector<16x1xf32>
    %28 = arith.addf %26, %27 : vector<16x1xf32>
    %29 = math.rsqrt %28 : vector<16x1xf32>
    %30 = vector.broadcast %29 : vector<16x1xf32> to vector<16x32xf32>
    %31 = arith.mulf %21, %30 : vector<16x32xf32>
    %c0_16 = arith.constant 0 : index
    %c0_17 = arith.constant 0 : index
    %32 = vector.load %arg6[%c0_16, %c0_17] : memref<1x32xf32, #tpu.memory_space<vmem>>, vector<1x32xf32>
    %33 = vector.broadcast %32 : vector<1x32xf32> to vector<16x32xf32>
    %34 = arith.mulf %31, %33 : vector<16x32xf32>
    %c0_18 = arith.constant 0 : index
    %c0_19 = arith.constant 0 : index
    %35 = vector.load %arg7[%c0_18, %c0_19] : memref<1x32xf32, #tpu.memory_space<vmem>>, vector<1x32xf32>
    %36 = vector.broadcast %35 : vector<1x32xf32> to vector<16x32xf32>
    %37 = arith.addf %34, %36 : vector<16x32xf32>
    %38 = arith.truncf %37 : vector<16x32xf32> to vector<16x32xbf16>
    %c0_20 = arith.constant 0 : index
    %c0_21 = arith.constant 0 : index
    %39 = vector.load %arg8[%c0_20, %c0_21] : memref<16x32xbf16, #tpu.memory_space<vmem>>, vector<16x32xbf16>
    tpu.vector_store %arg8[%c0_20, %c0_21], %38 {strides = array<i32>} : memref<16x32xbf16, #tpu.memory_space<vmem>>, vector<16x32xbf16>,
    return
  }
  func.func @transform_0(%arg0: i32) -> (i32, i32) {
    %c0_i32 = arith.constant 0 : i32
    %c0_i32_0 = arith.constant 0 : i32
    return %arg0, %c0_i32 : i32, i32
  }
  func.func @transform_1(%arg0: i32) -> (i32, i32) {
    %c0_i32 = arith.constant 0 : i32
    %c0_i32_0 = arith.constant 0 : i32
    %c0_i32_1 = arith.constant 0 : i32
    return %c0_i32, %c0_i32_0 : i32, i32
  }
  func.func @transform_2(%arg0: i32) -> (i32, i32) {
    %c0_i32 = arith.constant 0 : i32
    %c0_i32_0 = arith.constant 0 : i32
    %c0_i32_1 = arith.constant 0 : i32
    return %c0_i32, %c0_i32_0 : i32, i32
  }
  func.func @transform_3(%arg0: i32) -> (i32, i32) {
    %c0_i32 = arith.constant 0 : i32
    %c0_i32_0 = arith.constant 0 : i32
    %c0_i32_1 = arith.constant 0 : i32
    return %c0_i32, %c0_i32_0 : i32, i32
  }
  func.func @transform_4(%arg0: i32) -> (i32, i32) {
    %c0_i32 = arith.constant 0 : i32
    %c0_i32_0 = arith.constant 0 : i32
    %c0_i32_1 = arith.constant 0 : i32
    return %c0_i32, %c0_i32_0 : i32, i32
  }
  func.func @transform_5(%arg0: i32) -> (i32, i32) {
    %c0_i32 = arith.constant 0 : i32
    %c0_i32_0 = arith.constant 0 : i32
    %c0_i32_1 = arith.constant 0 : i32
    return %c0_i32, %c0_i32_0 : i32, i32
  }
  func.func @transform_6(%arg0: i32) -> (i32, i32) {
    %c0_i32 = arith.constant 0 : i32
    %c0_i32_0 = arith.constant 0 : i32
    %c0_i32_1 = arith.constant 0 : i32
    return %c0_i32, %c0_i32_0 : i32, i32
  }
  func.func @transform_7(%arg0: i32) -> (i32, i32) {
    %c0_i32 = arith.constant 0 : i32
    %c0_i32_0 = arith.constant 0 : i32
    return %arg0, %c0_i32 : i32, i32
  }
}

module attributes {stable_mosaic.version = 11 : i64} {
  func.func @_ln_kernel(%arg0: i32, %arg1: memref<16x32xbf16, #tpu.memory_space<vmem>>, %arg2: memref<1x32xf32, #tpu.memory_space<vmem>>, %arg3: memref<1x32xf32, #tpu.memory_space<vmem>>, %arg4: memref<16x32xbf16, #tpu.memory_space<vmem>>) attributes {dimension_semantics = [#tpu.dimension_semantics<parallel>], iteration_bounds = array<i64: 1>, scalar_prefetch = 0 : i64, scratch_operands = 0 : i64, tpu.core_type = #tpu.core_type<tc>, window_params = [{transform_indices = @transform_0, window_bounds = array<i64: 16, 32>}, {pipeline_mode = #tpu.pipeline_mode<synchronous>, transform_indices = @transform_1, window_bounds = array<i64: 1, 32>}, {pipeline_mode = #tpu.pipeline_mode<synchronous>, transform_indices = @transform_2, window_bounds = array<i64: 1, 32>}, {transform_indices = @transform_3, window_bounds = array<i64: 16, 32>}]} {
    %c0 = arith.constant 0 : index
    %c0_0 = arith.constant 0 : index
    %0 = vector.load %arg1[%c0, %c0_0] : memref<16x32xbf16, #tpu.memory_space<vmem>>, vector<16x32xbf16>
    %1 = arith.extf %0 : vector<16x32xbf16> to vector<16x32xf32>
    %cst = arith.constant dense<0.000000e+00> : vector<16xf32>
    %2 = vector.multi_reduction <add>, %1, %cst [1] : vector<16x32xf32> to vector<16xf32>
    %3 = vector.shape_cast %2 : vector<16xf32> to vector<16x1xf32>
    %cst_1 = arith.constant 3.200000e+01 : f32
    %4 = vector.broadcast %cst_1 : f32 to vector<16x1xf32>
    %5 = arith.divf %3, %4 : vector<16x1xf32>
    %6 = vector.broadcast %5 : vector<16x1xf32> to vector<16x32xf32>
    %7 = arith.subf %1, %6 : vector<16x32xf32>
    %8 = arith.mulf %7, %7 : vector<16x32xf32>
    %cst_2 = arith.constant dense<0.000000e+00> : vector<16xf32>
    %9 = vector.multi_reduction <add>, %8, %cst_2 [1] : vector<16x32xf32> to vector<16xf32>
    %10 = vector.shape_cast %9 : vector<16xf32> to vector<16x1xf32>
    %cst_3 = arith.constant 3.200000e+01 : f32
    %11 = vector.broadcast %cst_3 : f32 to vector<16x1xf32>
    %12 = arith.divf %10, %11 : vector<16x1xf32>
    %cst_4 = arith.constant 9.99999974E-6 : f32
    %13 = vector.broadcast %cst_4 : f32 to vector<16x1xf32>
    %14 = arith.addf %12, %13 : vector<16x1xf32>
    %15 = math.rsqrt %14 : vector<16x1xf32>
    %16 = vector.broadcast %15 : vector<16x1xf32> to vector<16x32xf32>
    %17 = arith.mulf %7, %16 : vector<16x32xf32>
    %c0_5 = arith.constant 0 : index
    %c0_6 = arith.constant 0 : index
    %18 = vector.load %arg2[%c0_5, %c0_6] : memref<1x32xf32, #tpu.memory_space<vmem>>, vector<1x32xf32>
    %19 = vector.broadcast %18 : vector<1x32xf32> to vector<16x32xf32>
    %20 = arith.mulf %17, %19 : vector<16x32xf32>
    %c0_7 = arith.constant 0 : index
    %c0_8 = arith.constant 0 : index
    %21 = vector.load %arg3[%c0_7, %c0_8] : memref<1x32xf32, #tpu.memory_space<vmem>>, vector<1x32xf32>
    %22 = vector.broadcast %21 : vector<1x32xf32> to vector<16x32xf32>
    %23 = arith.addf %20, %22 : vector<16x32xf32>
    %24 = arith.truncf %23 : vector<16x32xf32> to vector<16x32xbf16>
    %c0_9 = arith.constant 0 : index
    %c0_10 = arith.constant 0 : index
    %25 = vector.load %arg4[%c0_9, %c0_10] : memref<16x32xbf16, #tpu.memory_space<vmem>>, vector<16x32xbf16>
    tpu.vector_store %arg4[%c0_9, %c0_10], %24 {strides = array<i32>} : memref<16x32xbf16, #tpu.memory_space<vmem>>, vector<16x32xbf16>,
    return
  }
  func.func @transform_0(%arg0: i32) -> (i32, i32) {
    %c0_i32 = arith.constant 0 : i32
    %c0_i32_0 = arith.constant 0 : i32
    return %arg0, %c0_i32 : i32, i32
  }
  func.func @transform_1(%arg0: i32) -> (i32, i32) {
    %c0_i32 = arith.constant 0 : i32
    %c0_i32_0 = arith.constant 0 : i32
    %c0_i32_1 = arith.constant 0 : i32
    return %c0_i32, %c0_i32_0 : i32, i32
  }
  func.func @transform_2(%arg0: i32) -> (i32, i32) {
    %c0_i32 = arith.constant 0 : i32
    %c0_i32_0 = arith.constant 0 : i32
    %c0_i32_1 = arith.constant 0 : i32
    return %c0_i32, %c0_i32_0 : i32, i32
  }
  func.func @transform_3(%arg0: i32) -> (i32, i32) {
    %c0_i32 = arith.constant 0 : i32
    %c0_i32_0 = arith.constant 0 : i32
    return %arg0, %c0_i32 : i32, i32
  }
}

module attributes {stable_mosaic.version = 11 : i64} {
  func.func @_linear_kernel(%arg0: i32, %arg1: memref<16x32xbf16, #tpu.memory_space<vmem>>, %arg2: memref<32x64xbf16, #tpu.memory_space<vmem>>, %arg3: memref<1x64xf32, #tpu.memory_space<vmem>>, %arg4: memref<16x64xbf16, #tpu.memory_space<vmem>>) attributes {dimension_semantics = [#tpu.dimension_semantics<parallel>], iteration_bounds = array<i64: 1>, scalar_prefetch = 0 : i64, scratch_operands = 0 : i64, tpu.core_type = #tpu.core_type<tc>, window_params = [{transform_indices = @transform_0, window_bounds = array<i64: 16, 32>}, {pipeline_mode = #tpu.pipeline_mode<synchronous>, transform_indices = @transform_1, window_bounds = array<i64: 32, 64>}, {pipeline_mode = #tpu.pipeline_mode<synchronous>, transform_indices = @transform_2, window_bounds = array<i64: 1, 64>}, {transform_indices = @transform_3, window_bounds = array<i64: 16, 64>}]} {
    %c0 = arith.constant 0 : index
    %c0_0 = arith.constant 0 : index
    %0 = vector.load %arg1[%c0, %c0_0] : memref<16x32xbf16, #tpu.memory_space<vmem>>, vector<16x32xbf16>
    %c0_1 = arith.constant 0 : index
    %c0_2 = arith.constant 0 : index
    %1 = vector.load %arg2[%c0_1, %c0_2] : memref<32x64xbf16, #tpu.memory_space<vmem>>, vector<32x64xbf16>
    %cst = arith.constant dense<0.000000e+00> : vector<16x64xf32>
    %2 = tpu.matmul %0, %1, %cst {dimension_numbers = #tpu.dot_dimension_numbers<[1], [0], [0], [1], [0, 0, 1, 1], [], []>} : vector<16x32xbf16>, vector<32x64xbf16>, vector<16x64xf32> -> vector<16x64xf32>
    %c0_3 = arith.constant 0 : index
    %c0_4 = arith.constant 0 : index
    %3 = vector.load %arg3[%c0_3, %c0_4] : memref<1x64xf32, #tpu.memory_space<vmem>>, vector<1x64xf32>
    %4 = vector.broadcast %3 : vector<1x64xf32> to vector<16x64xf32>
    %5 = arith.addf %2, %4 : vector<16x64xf32>
    %6 = arith.truncf %5 : vector<16x64xf32> to vector<16x64xbf16>
    %c0_5 = arith.constant 0 : index
    %c0_6 = arith.constant 0 : index
    %7 = vector.load %arg4[%c0_5, %c0_6] : memref<16x64xbf16, #tpu.memory_space<vmem>>, vector<16x64xbf16>
    tpu.vector_store %arg4[%c0_5, %c0_6], %6 {strides = array<i32>} : memref<16x64xbf16, #tpu.memory_space<vmem>>, vector<16x64xbf16>,
    return
  }
  func.func @transform_0(%arg0: i32) -> (i32, i32) {
    %c0_i32 = arith.constant 0 : i32
    %c0_i32_0 = arith.constant 0 : i32
    return %arg0, %c0_i32 : i32, i32
  }
  func.func @transform_1(%arg0: i32) -> (i32, i32) {
    %c0_i32 = arith.constant 0 : i32
    %c0_i32_0 = arith.constant 0 : i32
    %c0_i32_1 = arith.constant 0 : i32
    return %c0_i32, %c0_i32_0 : i32, i32
  }
  func.func @transform_2(%arg0: i32) -> (i32, i32) {
    %c0_i32 = arith.constant 0 : i32
    %c0_i32_0 = arith.constant 0 : i32
    %c0_i32_1 = arith.constant 0 : i32
    return %c0_i32, %c0_i32_0 : i32, i32
  }
  func.func @transform_3(%arg0: i32) -> (i32, i32) {
    %c0_i32 = arith.constant 0 : i32
    %c0_i32_0 = arith.constant 0 : i32
    return %arg0, %c0_i32 : i32, i32
  }
}

module attributes {stable_mosaic.version = 11 : i64} {
  func.func @_linear_kernel(%arg0: i32, %arg1: memref<16x32xbf16, #tpu.memory_space<vmem>>, %arg2: memref<32x128xbf16, #tpu.memory_space<vmem>>, %arg3: memref<1x128xf32, #tpu.memory_space<vmem>>, %arg4: memref<16x128xf32, #tpu.memory_space<vmem>>) attributes {dimension_semantics = [#tpu.dimension_semantics<parallel>], iteration_bounds = array<i64: 1>, scalar_prefetch = 0 : i64, scratch_operands = 0 : i64, tpu.core_type = #tpu.core_type<tc>, window_params = [{transform_indices = @transform_0, window_bounds = array<i64: 16, 32>}, {pipeline_mode = #tpu.pipeline_mode<synchronous>, transform_indices = @transform_1, window_bounds = array<i64: 32, 128>}, {pipeline_mode = #tpu.pipeline_mode<synchronous>, transform_indices = @transform_2, window_bounds = array<i64: 1, 128>}, {transform_indices = @transform_3, window_bounds = array<i64: 16, 128>}]} {
    %c0 = arith.constant 0 : index
    %c0_0 = arith.constant 0 : index
    %0 = vector.load %arg1[%c0, %c0_0] : memref<16x32xbf16, #tpu.memory_space<vmem>>, vector<16x32xbf16>
    %c0_1 = arith.constant 0 : index
    %c0_2 = arith.constant 0 : index
    %1 = vector.load %arg2[%c0_1, %c0_2] : memref<32x128xbf16, #tpu.memory_space<vmem>>, vector<32x128xbf16>
    %cst = arith.constant dense<0.000000e+00> : vector<16x128xf32>
    %2 = tpu.matmul %0, %1, %cst {dimension_numbers = #tpu.dot_dimension_numbers<[1], [0], [0], [1], [0, 0, 1, 1], [], []>} : vector<16x32xbf16>, vector<32x128xbf16>, vector<16x128xf32> -> vector<16x128xf32>
    %c0_3 = arith.constant 0 : index
    %c0_4 = arith.constant 0 : index
    %3 = vector.load %arg3[%c0_3, %c0_4] : memref<1x128xf32, #tpu.memory_space<vmem>>, vector<1x128xf32>
    %4 = vector.broadcast %3 : vector<1x128xf32> to vector<16x128xf32>
    %5 = arith.addf %2, %4 : vector<16x128xf32>
    %c0_5 = arith.constant 0 : index
    %c0_6 = arith.constant 0 : index
    %6 = vector.load %arg4[%c0_5, %c0_6] : memref<16x128xf32, #tpu.memory_space<vmem>>, vector<16x128xf32>
    tpu.vector_store %arg4[%c0_5, %c0_6], %5 {strides = array<i32>} : memref<16x128xf32, #tpu.memory_space<vmem>>, vector<16x128xf32>,
    return
  }
  func.func @transform_0(%arg0: i32) -> (i32, i32) {
    %c0_i32 = arith.constant 0 : i32
    %c0_i32_0 = arith.constant 0 : i32
    return %arg0, %c0_i32 : i32, i32
  }
  func.func @transform_1(%arg0: i32) -> (i32, i32) {
    %c0_i32 = arith.constant 0 : i32
    %c0_i32_0 = arith.constant 0 : i32
    %c0_i32_1 = arith.constant 0 : i32
    return %c0_i32, %c0_i32_0 : i32, i32
  }
  func.func @transform_2(%arg0: i32) -> (i32, i32) {
    %c0_i32 = arith.constant 0 : i32
    %c0_i32_0 = arith.constant 0 : i32
    %c0_i32_1 = arith.constant 0 : i32
    return %c0_i32, %c0_i32_0 : i32, i32
  }
  func.func @transform_3(%arg0: i32) -> (i32, i32) {
    %c0_i32 = arith.constant 0 : i32
    %c0_i32_0 = arith.constant 0 : i32
    return %arg0, %c0_i32 : i32, i32
  }
}

</mosaic_0001>

<bundles_post_ra>
// kernel: transformer_s2s_forward.36
= control target key start
LH: loop header
LB: loop body
LE: loop exit
PB: predicated region body
PF: predicated region fallthrough
CT: control target
= control target key end

     0   :  { %v130_v0 = vmov 0.0   ;;  %vm131_vm0 = vmmov 0   ;;  %vm45_vm1 = vcmask 261120   ;;  %vm98_vm2 = vcmask 781312   ;;  %s170_s1 = inlined_call_operand.vmem [shape: bf16[32,96], index: 1, kind: input, shape index: {}]   ;;  %s171_s0 = inlined_call_operand.vmem [shape: bf16[16,32], index: 0, kind: input, shape index: {}]   ;;  %s172_s2 = inlined_call_operand.vmem [shape: f32[1,96], index: 2, kind: input, shape index: {}]   ;;  %s173_s3 = inlined_call_operand.vmem [shape: bf16[16,96], index: 3, kind: output, shape index: {}]  }
   0x1   :  { %117 = vmatprep.subr.bf16.mxu0 %v130_v0  ;;  %v127_v1 = vld [vmem:[%s170_s1] sm:$0xff]   ;;  %121 = vmatprep.mubr.msk.bf16.mxu0 %vm131_vm0, %v130_v0  ;;  %v128_v2 = vld [vmem:[%s170_s1 + $0x8] sm:$0xff]  }
   0x2   :  { %118 = vmatpush3.bf16.msra.mxu0 %v127_v1  ;;  %v129_v3 = vld [vmem:[%s171_s0] sm:$0xff]  }
   0x3   :  { %119 = vmatprep.subr.bf16.mxu0 %v130_v0  ;;  %v105_v4 = vld [vmem:[%s172_s2] ss:$0 sm:$0xff] }
   0x6   :  { %120 = vmatpush3.bf16.msra.mxu0 %v128_v2 }
   0x9   :  { %122 = vmatmul.mubr.msk.bf16.vlgmr.msra.gmra.mrb[0].mxu0 %vm45_vm1, %v129_v3 }
  0xdc   :  { %v83_v5 = vpop.f32.mrb[0].mxu0 }
  0xdd   :  { %v84_v6 = vadd.f32 %v105_v4, %v83_v5  ;;  %v123_v7 = vpop.f32.mrb[1].mxu0 }
  0xde   :  { %v86_v8 = vpop.f32.mrb[2].mxu0 }
  0xdf   :  { %v112_v9 = vpack.c.bf16 %v84_v6, %v84_v6  ;;  %v87_v10 = vadd.f32 %v105_v4, %v86_v8  ;;  %v124_v11 = vpop.f32.mrb[3].mxu0 }
  0xe1   :  { %99 = vst.msk [vmem:[%s173_s3] sm:$0xf] %vm98_vm2, %v112_v9  ;;  %v113_v12 = vpack.c.bf16 %v87_v10, %v87_v10 }
  0xe3   :  { %100 = vst.msk [vmem:[%s173_s3 + $0x4] sm:$0xf] %vm98_vm2, %v113_v12 }

// kernel: transformer_s2s_forward.39
= control target key start
LH: loop header
LB: loop body
LE: loop exit
PB: predicated region body
PF: predicated region fallthrough
CT: control target
= control target key end

     0   :  { %v130_v0 = vmov 0.0   ;;  %vm131_vm0 = vmmov 0   ;;  %vm45_vm1 = vcmask 261120   ;;  %vm98_vm2 = vcmask 257024   ;;  %s170_s1 = inlined_call_operand.vmem [shape: bf16[32,32], index: 1, kind: input, shape index: {}]   ;;  %s171_s0 = inlined_call_operand.vmem [shape: bf16[16,32], index: 0, kind: input, shape index: {}]   ;;  %s172_s2 = inlined_call_operand.vmem [shape: f32[1,32], index: 2, kind: input, shape index: {}]   ;;  %s173_s3 = inlined_call_operand.vmem [shape: bf16[16,32], index: 3, kind: output, shape index: {}]  }
   0x1   :  { %117 = vmatprep.subr.bf16.mxu0 %v130_v0  ;;  %v127_v1 = vld [vmem:[%s170_s1] sm:$0xff]   ;;  %121 = vmatprep.mubr.msk.bf16.mxu0 %vm131_vm0, %v130_v0  ;;  %v128_v2 = vld [vmem:[%s170_s1 + $0x8] sm:$0xff]  }
   0x2   :  { %118 = vmatpush3.bf16.msra.mxu0 %v127_v1  ;;  %v129_v3 = vld [vmem:[%s171_s0] sm:$0xff]  }
   0x3   :  { %119 = vmatprep.subr.bf16.mxu0 %v130_v0  ;;  %v105_v4 = vld [vmem:[%s172_s2] ss:$0 sm:$0xff] }
   0x6   :  { %120 = vmatpush3.bf16.msra.mxu0 %v128_v2 }
   0x9   :  { %122 = vmatmul.mubr.msk.bf16.vlgmr.msra.gmra.mrb[0].mxu0 %vm45_vm1, %v129_v3 }
  0xdc   :  { %v83_v5 = vpop.f32.mrb[0].mxu0 }
  0xdd   :  { %v84_v6 = vadd.f32 %v105_v4, %v83_v5  ;;  %v123_v7 = vpop.f32.mrb[1].mxu0 }
  0xde   :  { %v86_v8 = vpop.f32.mrb[2].mxu0 }
  0xdf   :  { %v112_v9 = vpack.c.bf16 %v84_v6, %v84_v6  ;;  %v87_v10 = vadd.f32 %v105_v4, %v86_v8  ;;  %v124_v11 = vpop.f32.mrb[3].mxu0 }
  0xe1   :  { %99 = vst.msk [vmem:[%s173_s3] sm:$0xf] %vm98_vm2, %v112_v9  ;;  %v113_v12 = vpack.c.bf16 %v87_v10, %v87_v10 }
  0xe3   :  { %100 = vst.msk [vmem:[%s173_s3 + $0x4] sm:$0xf] %vm98_vm2, %v113_v12 }

// kernel: transformer_s2s_forward.38
= control target key start
LH: loop header
LB: loop body
LE: loop exit
PB: predicated region body
PF: predicated region fallthrough
CT: control target
= control target key end

     0   :  { %v200_v0 = vmov 0.0   ;;  %vm201_vm0 = vmmov 0   ;;  %vm54_vm1 = vcmask 261120   ;;  %vm158_vm2 = vcmask 257024   ;;  %s269_s2 = inlined_call_operand.vmem [shape: bf16[32,32], index: 2, kind: input, shape index: {}]   ;;  %s270_s0 = inlined_call_operand.vmem [shape: bf16[16,32], index: 0, kind: input, shape index: {}]   ;;  %s271_s1 = inlined_call_operand.vmem [shape: bf16[16,32], index: 1, kind: input, shape index: {}]   ;;  %s272_s3 = inlined_call_operand.vmem [shape: f32[1,32], index: 3, kind: input, shape index: {}]   ;;  %s273_s4 = inlined_call_operand.vmem [shape: f32[1,32], index: 4, kind: input, shape index: {}]   ;;  %s274_s5 = inlined_call_operand.vmem [shape: f32[1,32], index: 5, kind: input, shape index: {}]   ;;  %s275_s6 = inlined_call_operand.vmem [shape: bf16[16,32], index: 6, kind: output, shape index: {}]  }
   0x1   :  { %183 = vmatprep.subr.bf16.mxu0 %v200_v0  ;;  %v193_v1 = vld [vmem:[%s269_s2] sm:$0xff]   ;;  %187 = vmatprep.mubr.msk.bf16.mxu0 %vm201_vm0, %v200_v0  ;;  %v194_v2 = vld [vmem:[%s269_s2 + $0x8] sm:$0xff]  }
   0x2   :  { %184 = vmatpush3.bf16.msra.mxu0 %v193_v1  ;;  %v195_v3 = vld [vmem:[%s270_s0] sm:$0xff]  }
   0x3   :  { %185 = vmatprep.subr.bf16.mxu0 %v200_v0  ;;  %v177_v4 = vld [vmem:[%s271_s1] sm:$0xff]  }
   0x4   :  { %v165_v5 = vld [vmem:[%s272_s3] ss:$0 sm:$0xff]  ;;  %v178_v6 = vunpack.c.l.bf16 %v177_v4  ;;  %v179_v10 = vunpack.c.h.bf16 %v177_v4 }
   0x5   :  { %v170_v35 = vld [vmem:[%s273_s4] ss:$0 sm:$0xff] }
   0x6   :  { %186 = vmatpush3.bf16.msra.mxu0 %v194_v2  ;;  %v171_v37 = vld [vmem:[%s274_s5] ss:$0 sm:$0xff] }
   0x9   :  { %188 = vmatmul.mubr.msk.bf16.vlgmr.msra.gmra.mrb[0].mxu0 %vm54_vm1, %v195_v3 }
  0xdc   :  { %v92_v7 = vpop.f32.mrb[0].mxu0 }
  0xdd   :  { %v93_v8 = vadd.f32 %v165_v5, %v92_v7  ;;  %v189_v9 = vpop.f32.mrb[1].mxu0 }
  0xde   :  { %v95_v11 = vpop.f32.mrb[2].mxu0 }
  0xdf   :  { %v96_v12 = vadd.f32 %v165_v5, %v95_v11  ;;  %v190_v13 = vpop.f32.mrb[3].mxu0  ;;  %v103_v14 = vadd.f32 %v178_v6, %v93_v8 }
  0xe1   :  { %v105_v15 = vsel %vm54_vm1, %v103_v14, 0.0  ;;  %v104_v16 = vadd.f32 %v179_v10, %v96_v12 }
  0xe2   :  { %106 = vadd.xlane.f32.xlu0 %v105_v15 }
  0xe3   :  { %v108_v17 = vsel %vm54_vm1, %v104_v16, 0.0 }
  0xe6   :  { %109 = vadd.xlane.f32.xlu0 %v108_v17 }
 0x16f   :  { %v107_v18 = vpop.xlane.xlu0 %106 }
 0x170   :  { %v112_v19 = vmul.f32 0.03125, %v107_v18 }
 0x172   :  { %v114_v20 = vsub.f32 %v103_v14, %v112_v19 }
 0x173   :  { %v110_v21 = vpop.xlane.xlu0 %109 }
 0x174   :  { %v113_v22 = vmul.f32 0.03125, %v110_v21  ;;  %v116_v23 = vmul.f32 %v114_v20, %v114_v20 }
 0x176   :  { %v115_v24 = vsub.f32 %v104_v16, %v113_v22  ;;  %v118_v25 = vsel %vm54_vm1, %v116_v23, 0.0 }
 0x177   :  { %119 = vadd.xlane.f32.xlu1 %v118_v25 }
 0x178   :  { %v117_v26 = vmul.f32 %v115_v24, %v115_v24 }
 0x17a   :  { %v121_v27 = vsel %vm54_vm1, %v117_v26, 0.0 }
 0x17b   :  { %122 = vadd.xlane.f32.xlu1 %v121_v27 }
 0x204   :  { %v120_v28 = vpop.xlane.xlu1 %119 }
 0x205   :  { %v124_v29 = vmul.f32 0.03125, %v120_v28 }
 0x207   :  { %v126_v30 = vadd.f32 1e-05, %v124_v29 }
 0x208   :  { %v123_v31 = vpop.xlane.xlu1 %122 }
 0x209   :  { %196 = vrsqrt.f32 %v126_v30  ;;  %v125_v32 = vmul.f32 0.03125, %v123_v31 }
 0x20b   :  { %v127_v33 = vadd.f32 1e-05, %v125_v32 }
 0x20d   :  { %198 = vrsqrt.f32 %v127_v33 }
 0x213   :  { %v197_v34 = vpop.eup %196 }
 0x214   :  { %v130_v36 = vmul.f32 %v197_v34, %v114_v20 }
 0x216   :  { %v139_v38 = vmul.f32 %v170_v35, %v130_v36 }
 0x217   :  { %v199_v39 = vpop.eup %198 }
 0x218   :  { %v148_v40 = vadd.f32 %v171_v37, %v139_v38  ;;  %v131_v41 = vmul.f32 %v199_v39, %v115_v24 }
 0x21a   :  { %v174_v42 = vpack.c.bf16 %v148_v40, %v148_v40  ;;  %v140_v43 = vmul.f32 %v170_v35, %v131_v41 }
 0x21c   :  { %159 = vst.msk [vmem:[%s275_s6] sm:$0xf] %vm158_vm2, %v174_v42  ;;  %v149_v44 = vadd.f32 %v171_v37, %v140_v43 }
 0x21e   :  { %v175_v45 = vpack.c.bf16 %v149_v44, %v149_v44 }
 0x220   :  { %160 = vst.msk [vmem:[%s275_s6 + $0x4] sm:$0xf] %vm158_vm2, %v175_v45 }

// kernel: transformer_s2s_forward.37
= control target key start
LH: loop header
LB: loop body
LE: loop exit
PB: predicated region body
PF: predicated region fallthrough
CT: control target
= control target key end

     0   :  { %s949_s15 = smov 0   ;;  %s1037_s0 = inlined_call_operand.vmem [shape: bf16[2,4,8,8], index: 0, kind: input, shape index: {}]   ;;  %s1038_s1 = inlined_call_operand.vmem [shape: bf16[2,4,8,8], index: 1, kind: input, shape index: {}]   ;;  %s1039_s2 = inlined_call_operand.vmem [shape: bf16[2,4,8,8], index: 2, kind: input, shape index: {}]   ;;  %s1040_s3 = inlined_call_operand.vmem [shape: f32[2,1,8], index: 3, kind: input, shape index: {}]   ;;  %s1041_s4 = inlined_call_operand.vmem [shape: bf16[2,4,8,8], index: 4, kind: output, shape index: {}]  }
   0x1 LB: > { %s796_s16 = sadd.s32 4294967295, %s920_s15   ;;  %p800_p0 = scmp.ge.s32.totalorder %s920_s15, 1  ;;  %s920_s15 = sphi %s949_s15, %s14_s15  }
   0x2   : > { %p190_p1 = scmp.lt.s32.totalorder %s920_s15, 3 }
   0x4   : > { %p191_p2 = pnand %p800_p0, %p190_p1 }
   0x5   : > { %p229_p3 = scmp.lt.s32.totalorder (!%p191_p2), %s796_s16, 1  ;;  %v922_v0 = vmov (!%p191_p2), 0.0   ;;  %vm923_vm0 = vmmov (!%p191_p2), 0   ;;  %vm272_vm1 = vcmask (!%p191_p2), 64512   ;;  %v457_v13 = vlaneseq (!%p191_p2) }
   0x6   : > { %194 = sbr.rel (%p191_p2) target bundleno = 783 (0x30f), region = 36  ;;  %840 = vmatprep.subr.bf16.mxu0 (!%p191_p2), %v922_v0  ;;  %846 = vmatprep.subr.bf16.mxu1 (!%p191_p2), %v922_v0  ;;  %vm517_vm3 = vcmask (!%p191_p2), 1043456   ;;  %vm703_vm4 = vcmask (!%p191_p2), 60416  }
   0x7   : > { %842 = vmatprep.mubr.msk.bf16.mxu0 (!%p191_p2), %vm923_vm0, %v922_v0  ;;  %848 = vmatprep.mubr.msk.bf16.mxu1 (!%p191_p2), %vm923_vm0, %v922_v0  ;;  %v458_v14 = vshrl.u32 (!%p191_p2), %v457_v13, 7  ;;  %v460_v15 = vand.u32 (!%p191_p2), 127, %v457_v13 }
   0x9   : > { %vm461_vm2 = vcmp.gt.s32.totalorder (!%p191_p2), %v460_v15, %v458_v14 }
   0xd   : > { %s1043_s16 = smov (!%p229_p3, %s796_s16), 1 }
   0xe   : > { %s966_s17 = sshll.u32 %s1043_s16, 4  ;;  %s246_s26 = scalar_lea.vmem %s1040_s3, %s1043_s16 }
   0xf   : > { %s238_s20 = scalar_lea.vmem %s1038_s1, %s966_s17  ;;  %s233_s23 = scalar_lea.vmem %s1037_s0, %s966_s17  ;;  %v809_v16 = vld [vmem:[%s246_s26] ss:$0 sm:$0xff] }
  0x10   : > { %v257_v1 = vld [vmem:[%s238_s20] sm:$0xf]  ;;  %v258_v2 = vld [vmem:[%s238_s20 + $0x4] sm:$0xf]  ;;  %v259_v5 = vld [vmem:[%s238_s20 + $0x8] sm:$0xf]  ;;  %s243_s29 = scalar_lea.vmem %s1039_s2, %s966_s17  ;;  %s251_s6 = scalar_lea.vmem %s1041_s4, %s966_s17 }
  0x11   : > { %v277_v3 = vsel %vm272_vm1, %v257_v1, 0  ;;  %v323_v4 = vsel %vm272_vm1, %v258_v2, 0  ;;  %v260_v6 = vld [vmem:[%s238_s20 + $0xc] sm:$0xf]  ;;  %v253_v7 = vld [vmem:[%s233_s23] sm:$0xf] }
  0x12   : > { %841 = vmatpush3.bf16.xpose.msra.mxu0 %v277_v3  ;;  %847 = vmatpush3.bf16.xpose.msra.mxu1 %v323_v4  ;;  %v254_v8 = vld [vmem:[%s233_s23 + $0x4] sm:$0xf]  ;;  %v369_v9 = vsel %vm272_vm1, %v259_v5, 0  ;;  %v415_v10 = vsel %vm272_vm1, %v260_v6, 0  ;;  %v255_v11 = vld [vmem:[%s233_s23 + $0x8] sm:$0xf] }
  0x13   : > { %852 = vmatprep.subr.bf16.mxu0 %v922_v0  ;;  %858 = vmatprep.subr.bf16.mxu1 %v922_v0  ;;  %v256_v12 = vld [vmem:[%s233_s23 + $0xc] sm:$0xf]  ;;  %v261_v2 = vld [vmem:[%s243_s29] sm:$0xf]  ;;  %v262_v4 = vld [vmem:[%s243_s29 + $0x4] sm:$0xf] }
  0x14   : > { %v519_v3 = vsel %vm517_vm3, %v261_v2, 0  ;;  %v565_v5 = vsel %vm517_vm3, %v262_v4, 0  ;;  %v263_v6 = vld [vmem:[%s243_s29 + $0x8] sm:$0xf] }
  0x19   : > { %843 = vmatmul.mubr.msk.bf16.vlgmr.msra.gmra.mrb[0].mxu0 %vm272_vm1, %v253_v7  ;;  %849 = vmatmul.mubr.msk.bf16.vlgmr.msra.gmra.mrb[0].mxu1 %vm272_vm1, %v254_v8  ;;  %v611_v7 = vsel %vm517_vm3, %v263_v6, 0  ;;  %v264_v8 = vld [vmem:[%s243_s29 + $0xc] sm:$0xf] }
  0x1a   : > { %853 = vmatpush3.bf16.xpose.msra.mxu0 %v369_v9  ;;  %859 = vmatpush3.bf16.xpose.msra.mxu1 %v415_v10  ;;  %v657_v9 = vsel %vm517_vm3, %v264_v8, 0 }
  0x1b   : > { %854 = vmatprep.mubr.msk.bf16.mxu0 %vm923_vm0, %v922_v0  ;;  %860 = vmatprep.mubr.msk.bf16.mxu1 %vm923_vm0, %v922_v0 }
  0x1c   : > { %864 = vmatprep.subr.bf16.mxu0 %v922_v0  ;;  %870 = vmatprep.subr.bf16.mxu1 %v922_v0 }
  0x21   : > { %855 = vmatmul.mubr.msk.bf16.vlgmr.msra.gmra.mrb[4].mxu0 %vm272_vm1, %v255_v11  ;;  %861 = vmatmul.mubr.msk.bf16.vlgmr.msra.gmra.mrb[4].mxu1 %vm272_vm1, %v256_v12 }
  0x22   : > { %866 = vmatprep.mubr.msk.bf16.mxu0 %vm923_vm0, %v922_v0  ;;  %872 = vmatprep.mubr.msk.bf16.mxu1 %vm923_vm0, %v922_v0 }
  0x23   : > { %865 = vmatpush3.bf16.msra.mxu0 %v519_v3  ;;  %871 = vmatpush3.bf16.msra.mxu1 %v565_v5 }
  0x24   : > { %876 = vmatprep.subr.bf16.mxu0 %v922_v0  ;;  %882 = vmatprep.subr.bf16.mxu1 %v922_v0 }
  0xec   : > { %v313_v17 = vpop.f32.mrb[0].mxu0  ;;  %v359_v18 = vpop.f32.mrb[0].mxu1 }
  0xed   : > { %v314_v19 = vadd.f32 %v809_v16, %v313_v17  ;;  %v844_v20 = vpop.f32.mrb[1].mxu0  ;;  %v360_v21 = vadd.f32 %v809_v16, %v359_v18  ;;  %v850_v22 = vpop.f32.mrb[1].mxu1 }
  0xee   : > { %v316_v23 = vpop.f32.mrb[2].mxu0  ;;  %v362_v24 = vpop.f32.mrb[2].mxu1 }
  0xef   : > { %v845_v25 = vpop.f32.mrb[3].mxu0  ;;  %v851_v26 = vpop.f32.mrb[3].mxu1  ;;  %v462_v27 = vsel %vm461_vm2, -1e+30, %v314_v19  ;;  %v463_v28 = vsel %vm461_vm2, -1e+30, %v360_v21 }
  0xf0   : > { %v466_v29 = vsel %vm272_vm1, %v462_v27, -inf  ;;  %v469_v30 = vsel %vm272_vm1, %v463_v28, -inf }
  0xf1   : > { %467 = vmax.xlane.f32.xlu0 %v466_v29 }
  0xf4   : > { %v405_v31 = vpop.f32.mrb[4].mxu0  ;;  %v451_v32 = vpop.f32.mrb[4].mxu1 }
  0xf5   : > { %v406_v33 = vadd.f32 %v809_v16, %v405_v31  ;;  %470 = vmax.xlane.f32.xlu0 %v469_v30  ;;  %v856_v34 = vpop.f32.mrb[5].mxu0  ;;  %v452_v35 = vadd.f32 %v809_v16, %v451_v32  ;;  %v862_v36 = vpop.f32.mrb[5].mxu1 }
  0xf6   : > { %v408_v37 = vpop.f32.mrb[6].mxu0  ;;  %v454_v38 = vpop.f32.mrb[6].mxu1 }
  0xf7   : > { %v857_v39 = vpop.f32.mrb[7].mxu0  ;;  %v863_v40 = vpop.f32.mrb[7].mxu1  ;;  %v464_v41 = vsel %vm461_vm2, -1e+30, %v406_v33  ;;  %v465_v42 = vsel %vm461_vm2, -1e+30, %v452_v35 }
  0xf8   : > { %v472_v43 = vsel %vm272_vm1, %v464_v41, -inf  ;;  %v475_v44 = vsel %vm272_vm1, %v465_v42, -inf }
  0xf9   : > { %473 = vmax.xlane.f32.xlu1 %v472_v43 }
  0xfd   : > { %476 = vmax.xlane.f32.xlu1 %v475_v44 }
 0x17e   : > { %v468_v45 = vpop.xlane.xlu0 %467 }
 0x17f   : > { %v478_v46 = vsub.f32 %v462_v27, %v468_v45 }
 0x181   : > { %v482_v47 = vmul.f32 1.442695, %v478_v46 }
 0x182   : > { %v471_v48 = vpop.xlane.xlu0 %470 }
 0x183   : > { %898 = vpow2.f32 %v482_v47  ;;  %v479_v49 = vsub.f32 %v463_v28, %v471_v48 }
 0x185   : > { %v484_v50 = vmul.f32 1.442695, %v479_v49 }
 0x186   : > { %v474_v51 = vpop.xlane.xlu1 %473 }
 0x187   : > { %900 = vpow2.f32 %v484_v50  ;;  %v480_v52 = vsub.f32 %v464_v41, %v474_v51 }
 0x189   : > { %v486_v53 = vmul.f32 1.442695, %v480_v52 }
 0x18a   : > { %v477_v54 = vpop.xlane.xlu1 %476 }
 0x18b   : > { %902 = vpow2.f32 %v486_v53  ;;  %v481_v55 = vsub.f32 %v465_v42, %v477_v54 }
 0x18d   : > { %v899_v56 = vpop.eup %898  ;;  %v488_v57 = vmul.f32 1.442695, %v481_v55 }
 0x18e   : > { %v490_v58 = vsel %vm272_vm1, %v899_v56, 0.0 }
 0x18f   : > { %904 = vpow2.f32 %v488_v57  ;;  %491 = vadd.xlane.f32.xlu0 %v490_v58 }
 0x191   : > { %v901_v59 = vpop.eup %900 }
 0x192   : > { %v493_v60 = vsel %vm272_vm1, %v901_v59, 0.0 }
 0x193   : > { %494 = vadd.xlane.f32.xlu1 %v493_v60 }
 0x195   : > { %v903_v61 = vpop.eup %902 }
 0x196   : > { %v496_v62 = vsel %vm272_vm1, %v903_v61, 0.0 }
 0x197   : > { %497 = vadd.xlane.f32.xlu0 %v496_v62 }
 0x199   : > { %v905_v63 = vpop.eup %904 }
 0x19a   : > { %v499_v1 = vsel %vm272_vm1, %v905_v63, 0.0 }
 0x19b   : > { %500 = vadd.xlane.f32.xlu1 %v499_v1 }
 0x21c   : > { %v492_v10 = vpop.xlane.xlu0 %491 }
 0x21d   : > { %906 = vrcp.f32 %v492_v10 }
 0x220   : > { %v495_v11 = vpop.xlane.xlu1 %494 }
 0x221   : > { %908 = vrcp.f32 %v495_v11 }
 0x224   : > { %v498_v12 = vpop.xlane.xlu0 %497 }
 0x225   : > { %910 = vrcp.f32 %v498_v12 }
 0x227   : > { %v907_v13 = vpop.eup %906 }
 0x228   : > { %v506_v14 = vmul.f32 %v907_v13, %v899_v56  ;;  %v501_v15 = vpop.xlane.xlu1 %500 }
 0x229   : > { %912 = vrcp.f32 %v501_v15 }
 0x22a   : > { %v510_v16 = vpack.c.bf16 %v506_v14, %v506_v14 }
 0x22b   : > { %v909_v17 = vpop.eup %908 }
 0x22c   : > { %v507_v18 = vmul.f32 %v909_v17, %v901_v59  ;;  %867 = vmatmul.mubr.msk.bf16.vlgmr.msra.gmra.mrb[8].mxu0 %vm272_vm1, %v510_v16 }
 0x22d   : > { %877 = vmatpush3.bf16.msra.mxu0 %v611_v7  ;;  %878 = vmatprep.mubr.msk.bf16.mxu0 %vm923_vm0, %v922_v0 }
 0x22e   : > { %v511_v19 = vpack.c.bf16 %v507_v18, %v507_v18 }
 0x22f   : > { %v911_v20 = vpop.eup %910 }
 0x230   : > { %v508_v21 = vmul.f32 %v911_v20, %v903_v61  ;;  %873 = vmatmul.mubr.msk.bf16.vlgmr.msra.gmra.mrb[8].mxu1 %vm272_vm1, %v511_v19 }
 0x231   : > { %883 = vmatpush3.bf16.msra.mxu1 %v657_v9  ;;  %884 = vmatprep.mubr.msk.bf16.mxu1 %vm923_vm0, %v922_v0 }
 0x232   : > { %v512_v22 = vpack.c.bf16 %v508_v21, %v508_v21 }
 0x233   : > { %v913_v23 = vpop.eup %912 }
 0x234   : > { %v509_v24 = vmul.f32 %v913_v23, %v905_v63  ;;  %879 = vmatmul.mubr.msk.bf16.vlgmr.msra.gmra.mrb[12].mxu0 %vm272_vm1, %v512_v22 }
 0x236   : > { %v513_v25 = vpack.c.bf16 %v509_v24, %v509_v24 }
 0x238   : > { %885 = vmatmul.mubr.msk.bf16.vlgmr.msra.gmra.mrb[12].mxu1 %vm272_vm1, %v513_v25 }
 0x2ff   : > { %v555_v26 = vpop.f32.mrb[8].mxu0 }
 0x300   : > { %v699_v27 = vpack.c.bf16 %v555_v26, %v555_v26  ;;  %v868_v28 = vpop.f32.mrb[9].mxu0 }
 0x301   : > { %v558_v29 = vpop.f32.mrb[10].mxu0 }
 0x302   : > { %704 = vst.msk [vmem:[%s251_s6] sm:$0xf] %vm703_vm4, %v699_v27  ;;  %v869_v0 = vpop.f32.mrb[11].mxu0 }
 0x303   : > { %v601_v30 = vpop.f32.mrb[8].mxu1 }
 0x304   : > { %v700_v31 = vpack.c.bf16 %v601_v30, %v601_v30  ;;  %v874_v32 = vpop.f32.mrb[9].mxu1 }
 0x305   : > { %v604_v33 = vpop.f32.mrb[10].mxu1 }
 0x306   : > { %705 = vst.msk [vmem:[%s251_s6 + $0x4] sm:$0xf] %vm703_vm4, %v700_v31  ;;  %v875_v34 = vpop.f32.mrb[11].mxu1 }
 0x307   : > { %v647_v35 = vpop.f32.mrb[12].mxu0 }
 0x308   : > { %v701_v36 = vpack.c.bf16 %v647_v35, %v647_v35  ;;  %v880_v37 = vpop.f32.mrb[13].mxu0 }
 0x309   : > { %v650_v38 = vpop.f32.mrb[14].mxu0 }
 0x30a   : > { %706 = vst.msk [vmem:[%s251_s6 + $0x8] sm:$0xf] %vm703_vm4, %v701_v36  ;;  %v881_v39 = vpop.f32.mrb[15].mxu0 }
 0x30b   : > { %v693_v40 = vpop.f32.mrb[12].mxu1 }
 0x30c   : > { %v702_v41 = vpack.c.bf16 %v693_v40, %v693_v40  ;;  %v886_v42 = vpop.f32.mrb[13].mxu1 }
 0x30d   : > { %v696_v43 = vpop.f32.mrb[14].mxu1 }
 0x30e   : > { %707 = vst.msk [vmem:[%s251_s6 + $0xc] sm:$0xf] %vm703_vm4, %v702_v41  ;;  %v887_v44 = vpop.f32.mrb[15].mxu1 }
 0x30f PF: > { %s14_s15 = sadd.s32 1, %s920_s15  }
 0x310   : > { %p11_p4 = scmp.ge.s32.totalorder %s14_s15, 4  }
 0x312   :  { %13 = sbr.rel (!%p11_p4) target bundleno = 1 (0x1), region = 75 }

// kernel: transformer_s2s_forward.35
= control target key start
LH: loop header
LB: loop body
LE: loop exit
PB: predicated region body
PF: predicated region fallthrough
CT: control target
= control target key end

     0   :  { %vm18_vm0 = vcmask 261120   ;;  %vm72_vm1 = vcmask 257024   ;;  %s132_s0 = inlined_call_operand.vmem [shape: bf16[16,32], index: 0, kind: input, shape index: {}]   ;;  %s133_s1 = inlined_call_operand.vmem [shape: f32[1,32], index: 1, kind: input, shape index: {}]   ;;  %s134_s2 = inlined_call_operand.vmem [shape: f32[1,32], index: 2, kind: input, shape index: {}]   ;;  %s135_s3 = inlined_call_operand.vmem [shape: bf16[16,32], index: 3, kind: output, shape index: {}]  }
   0x1   :  { %v86_v0 = vld [vmem:[%s132_s0] sm:$0xff]  }
   0x2   :  { %v87_v1 = vunpack.c.l.bf16 %v86_v0  ;;  %v88_v2 = vunpack.c.h.bf16 %v86_v0  ;;  %v79_v22 = vld [vmem:[%s133_s1] ss:$0 sm:$0xff] }
   0x3   :  { %v80_v24 = vld [vmem:[%s134_s2] ss:$0 sm:$0xff] }
   0x4   :  { %v19_v3 = vsel %vm18_vm0, %v87_v1, 0.0  ;;  %v22_v4 = vsel %vm18_vm0, %v88_v2, 0.0 }
   0x5   :  { %20 = vadd.xlane.f32.xlu0 %v19_v3 }
   0x9   :  { %23 = vadd.xlane.f32.xlu0 %v22_v4 }
  0x92   :  { %v21_v5 = vpop.xlane.xlu0 %20 }
  0x93   :  { %v26_v6 = vmul.f32 0.03125, %v21_v5 }
  0x95   :  { %v28_v7 = vsub.f32 %v87_v1, %v26_v6 }
  0x96   :  { %v24_v8 = vpop.xlane.xlu0 %23 }
  0x97   :  { %v27_v9 = vmul.f32 0.03125, %v24_v8  ;;  %v30_v10 = vmul.f32 %v28_v7, %v28_v7 }
  0x99   :  { %v29_v11 = vsub.f32 %v88_v2, %v27_v9  ;;  %v32_v12 = vsel %vm18_vm0, %v30_v10, 0.0 }
  0x9a   :  { %33 = vadd.xlane.f32.xlu1 %v32_v12 }
  0x9b   :  { %v31_v13 = vmul.f32 %v29_v11, %v29_v11 }
  0x9d   :  { %v35_v14 = vsel %vm18_vm0, %v31_v13, 0.0 }
  0x9e   :  { %36 = vadd.xlane.f32.xlu1 %v35_v14 }
 0x127   :  { %v34_v15 = vpop.xlane.xlu1 %33 }
 0x128   :  { %v38_v16 = vmul.f32 0.03125, %v34_v15 }
 0x12a   :  { %v40_v17 = vadd.f32 1e-05, %v38_v16 }
 0x12b   :  { %v37_v18 = vpop.xlane.xlu1 %36 }
 0x12c   :  { %89 = vrsqrt.f32 %v40_v17  ;;  %v39_v19 = vmul.f32 0.03125, %v37_v18 }
 0x12e   :  { %v41_v20 = vadd.f32 1e-05, %v39_v19 }
 0x130   :  { %91 = vrsqrt.f32 %v41_v20 }
 0x136   :  { %v90_v21 = vpop.eup %89 }
 0x137   :  { %v44_v23 = vmul.f32 %v90_v21, %v28_v7 }
 0x139   :  { %v53_v25 = vmul.f32 %v79_v22, %v44_v23 }
 0x13a   :  { %v92_v26 = vpop.eup %91 }
 0x13b   :  { %v62_v27 = vadd.f32 %v80_v24, %v53_v25  ;;  %v45_v28 = vmul.f32 %v92_v26, %v29_v11 }
 0x13d   :  { %v83_v29 = vpack.c.bf16 %v62_v27, %v62_v27  ;;  %v54_v30 = vmul.f32 %v79_v22, %v45_v28 }
 0x13f   :  { %73 = vst.msk [vmem:[%s135_s3] sm:$0xf] %vm72_vm1, %v83_v29  ;;  %v63_v31 = vadd.f32 %v80_v24, %v54_v30 }
 0x141   :  { %v84_v32 = vpack.c.bf16 %v63_v31, %v63_v31 }
 0x143   :  { %74 = vst.msk [vmem:[%s135_s3 + $0x4] sm:$0xf] %vm72_vm1, %v84_v32 }

// kernel: transformer_s2s_forward.40
= control target key start
LH: loop header
LB: loop body
LE: loop exit
PB: predicated region body
PF: predicated region fallthrough
CT: control target
= control target key end

     0   :  { %v130_v0 = vmov 0.0   ;;  %vm131_vm0 = vmmov 0   ;;  %vm45_vm1 = vcmask 261120   ;;  %vm98_vm2 = vcmask 519168   ;;  %s170_s1 = inlined_call_operand.vmem [shape: bf16[32,64], index: 1, kind: input, shape index: {}]   ;;  %s171_s0 = inlined_call_operand.vmem [shape: bf16[16,32], index: 0, kind: input, shape index: {}]   ;;  %s172_s2 = inlined_call_operand.vmem [shape: f32[1,64], index: 2, kind: input, shape index: {}]   ;;  %s173_s3 = inlined_call_operand.vmem [shape: bf16[16,64], index: 3, kind: output, shape index: {}]  }
   0x1   :  { %117 = vmatprep.subr.bf16.mxu0 %v130_v0  ;;  %v127_v1 = vld [vmem:[%s170_s1] sm:$0xff]   ;;  %121 = vmatprep.mubr.msk.bf16.mxu0 %vm131_vm0, %v130_v0  ;;  %v128_v2 = vld [vmem:[%s170_s1 + $0x8] sm:$0xff]  }
   0x2   :  { %118 = vmatpush3.bf16.msra.mxu0 %v127_v1  ;;  %v129_v3 = vld [vmem:[%s171_s0] sm:$0xff]  }
   0x3   :  { %119 = vmatprep.subr.bf16.mxu0 %v130_v0  ;;  %v105_v4 = vld [vmem:[%s172_s2] ss:$0 sm:$0xff] }
   0x6   :  { %120 = vmatpush3.bf16.msra.mxu0 %v128_v2 }
   0x9   :  { %122 = vmatmul.mubr.msk.bf16.vlgmr.msra.gmra.mrb[0].mxu0 %vm45_vm1, %v129_v3 }
  0xdc   :  { %v83_v5 = vpop.f32.mrb[0].mxu0 }
  0xdd   :  { %v84_v6 = vadd.f32 %v105_v4, %v83_v5  ;;  %v123_v7 = vpop.f32.mrb[1].mxu0 }
  0xde   :  { %v86_v8 = vpop.f32.mrb[2].mxu0 }
  0xdf   :  { %v112_v9 = vpack.c.bf16 %v84_v6, %v84_v6  ;;  %v87_v10 = vadd.f32 %v105_v4, %v86_v8  ;;  %v124_v11 = vpop.f32.mrb[3].mxu0 }
  0xe1   :  { %99 = vst.msk [vmem:[%s173_s3] sm:$0xf] %vm98_vm2, %v112_v9  ;;  %v113_v12 = vpack.c.bf16 %v87_v10, %v87_v10 }
  0xe3   :  { %100 = vst.msk [vmem:[%s173_s3 + $0x4] sm:$0xf] %vm98_vm2, %v113_v12 }

// kernel: transformer_s2s_forward.28
= control target key start
LH: loop header
LB: loop body
LE: loop exit
PB: predicated region body
PF: predicated region fallthrough
CT: control target
= control target key end

     0   :  { %s940_s15 = smov 0   ;;  %s1024_s0 = inlined_call_operand.vmem [shape: bf16[2,4,8,8], index: 0, kind: input, shape index: {}]   ;;  %s1025_s1 = inlined_call_operand.vmem [shape: bf16[2,4,8,8], index: 1, kind: input, shape index: {}]   ;;  %s1026_s2 = inlined_call_operand.vmem [shape: bf16[2,4,8,8], index: 2, kind: input, shape index: {}]   ;;  %s1027_s3 = inlined_call_operand.vmem [shape: f32[2,1,8], index: 3, kind: input, shape index: {}]   ;;  %s1028_s4 = inlined_call_operand.vmem [shape: bf16[2,4,8,8], index: 4, kind: output, shape index: {}]  }
   0x1 LB: > { %s787_s16 = sadd.s32 4294967295, %s911_s15   ;;  %p791_p0 = scmp.ge.s32.totalorder %s911_s15, 1  ;;  %s911_s15 = sphi %s940_s15, %s14_s15  }
   0x2   : > { %p190_p1 = scmp.lt.s32.totalorder %s911_s15, 3 }
   0x4   : > { %p191_p2 = pnand %p791_p0, %p190_p1 }
   0x5   : > { %p229_p3 = scmp.lt.s32.totalorder (!%p191_p2), %s787_s16, 1  ;;  %v913_v0 = vmov (!%p191_p2), 0.0   ;;  %vm914_vm0 = vmmov (!%p191_p2), 0   ;;  %vm272_vm1 = vcmask (!%p191_p2), 64512   ;;  %vm508_vm2 = vcmask (!%p191_p2), 1043456  }
   0x6   : > { %194 = sbr.rel (%p191_p2) target bundleno = 782 (0x30e), region = 36  ;;  %831 = vmatprep.subr.bf16.mxu0 (!%p191_p2), %v913_v0  ;;  %837 = vmatprep.subr.bf16.mxu1 (!%p191_p2), %v913_v0  ;;  %vm694_vm3 = vcmask (!%p191_p2), 60416  }
   0x7   : > { %833 = vmatprep.mubr.msk.bf16.mxu0 (!%p191_p2), %vm914_vm0, %v913_v0  ;;  %839 = vmatprep.mubr.msk.bf16.mxu1 (!%p191_p2), %vm914_vm0, %v913_v0 }
   0xd   : > { %s1030_s16 = smov (!%p229_p3, %s787_s16), 1 }
   0xe   : > { %s957_s17 = sshll.u32 %s1030_s16, 4  ;;  %s246_s26 = scalar_lea.vmem %s1027_s3, %s1030_s16 }
   0xf   : > { %s238_s20 = scalar_lea.vmem %s1025_s1, %s957_s17  ;;  %s233_s23 = scalar_lea.vmem %s1024_s0, %s957_s17  ;;  %v800_v13 = vld [vmem:[%s246_s26] ss:$0 sm:$0xff] }
  0x10   : > { %v257_v1 = vld [vmem:[%s238_s20] sm:$0xf]  ;;  %v258_v2 = vld [vmem:[%s238_s20 + $0x4] sm:$0xf]  ;;  %v259_v5 = vld [vmem:[%s238_s20 + $0x8] sm:$0xf]  ;;  %s243_s29 = scalar_lea.vmem %s1026_s2, %s957_s17  ;;  %s251_s6 = scalar_lea.vmem %s1028_s4, %s957_s17 }
  0x11   : > { %v277_v3 = vsel %vm272_vm1, %v257_v1, 0  ;;  %v323_v4 = vsel %vm272_vm1, %v258_v2, 0  ;;  %v260_v6 = vld [vmem:[%s238_s20 + $0xc] sm:$0xf]  ;;  %v253_v7 = vld [vmem:[%s233_s23] sm:$0xf] }
  0x12   : > { %832 = vmatpush3.bf16.xpose.msra.mxu0 %v277_v3  ;;  %838 = vmatpush3.bf16.xpose.msra.mxu1 %v323_v4  ;;  %v254_v8 = vld [vmem:[%s233_s23 + $0x4] sm:$0xf]  ;;  %v369_v9 = vsel %vm272_vm1, %v259_v5, 0  ;;  %v415_v10 = vsel %vm272_vm1, %v260_v6, 0  ;;  %v255_v11 = vld [vmem:[%s233_s23 + $0x8] sm:$0xf] }
  0x13   : > { %843 = vmatprep.subr.bf16.mxu0 %v913_v0  ;;  %849 = vmatprep.subr.bf16.mxu1 %v913_v0  ;;  %v256_v12 = vld [vmem:[%s233_s23 + $0xc] sm:$0xf]  ;;  %v261_v58 = vld [vmem:[%s243_s29] sm:$0xf]  ;;  %v262_v60 = vld [vmem:[%s243_s29 + $0x4] sm:$0xf] }
  0x14   : > { %v510_v59 = vsel %vm508_vm2, %v261_v58, 0  ;;  %v556_v61 = vsel %vm508_vm2, %v262_v60, 0  ;;  %v263_v62 = vld [vmem:[%s243_s29 + $0x8] sm:$0xf]  ;;  %v264_v1 = vld [vmem:[%s243_s29 + $0xc] sm:$0xf] }
  0x15   : > { %v602_v63 = vsel %vm508_vm2, %v263_v62, 0  ;;  %v648_v2 = vsel %vm508_vm2, %v264_v1, 0 }
  0x19   : > { %834 = vmatmul.mubr.msk.bf16.vlgmr.msra.gmra.mrb[0].mxu0 %vm272_vm1, %v253_v7  ;;  %840 = vmatmul.mubr.msk.bf16.vlgmr.msra.gmra.mrb[0].mxu1 %vm272_vm1, %v254_v8 }
  0x1a   : > { %844 = vmatpush3.bf16.xpose.msra.mxu0 %v369_v9  ;;  %850 = vmatpush3.bf16.xpose.msra.mxu1 %v415_v10 }
  0x1b   : > { %845 = vmatprep.mubr.msk.bf16.mxu0 %vm914_vm0, %v913_v0  ;;  %851 = vmatprep.mubr.msk.bf16.mxu1 %vm914_vm0, %v913_v0 }
  0x1c   : > { %855 = vmatprep.subr.bf16.mxu0 %v913_v0  ;;  %861 = vmatprep.subr.bf16.mxu1 %v913_v0 }
  0x21   : > { %846 = vmatmul.mubr.msk.bf16.vlgmr.msra.gmra.mrb[4].mxu0 %vm272_vm1, %v255_v11  ;;  %852 = vmatmul.mubr.msk.bf16.vlgmr.msra.gmra.mrb[4].mxu1 %vm272_vm1, %v256_v12 }
  0x22   : > { %857 = vmatprep.mubr.msk.bf16.mxu0 %vm914_vm0, %v913_v0  ;;  %863 = vmatprep.mubr.msk.bf16.mxu1 %vm914_vm0, %v913_v0 }
  0x23   : > { %856 = vmatpush3.bf16.msra.mxu0 %v510_v59  ;;  %862 = vmatpush3.bf16.msra.mxu1 %v556_v61 }
  0x24   : > { %867 = vmatprep.subr.bf16.mxu0 %v913_v0  ;;  %873 = vmatprep.subr.bf16.mxu1 %v913_v0 }
  0xec   : > { %v313_v14 = vpop.f32.mrb[0].mxu0  ;;  %v359_v15 = vpop.f32.mrb[0].mxu1 }
  0xed   : > { %v314_v16 = vadd.f32 %v800_v13, %v313_v14  ;;  %v835_v17 = vpop.f32.mrb[1].mxu0  ;;  %v360_v18 = vadd.f32 %v800_v13, %v359_v15  ;;  %v841_v19 = vpop.f32.mrb[1].mxu1 }
  0xee   : > { %v316_v20 = vpop.f32.mrb[2].mxu0  ;;  %v362_v21 = vpop.f32.mrb[2].mxu1 }
  0xef   : > { %v836_v22 = vpop.f32.mrb[3].mxu0  ;;  %v457_v23 = vsel %vm272_vm1, %v314_v16, -inf  ;;  %v842_v24 = vpop.f32.mrb[3].mxu1  ;;  %v460_v25 = vsel %vm272_vm1, %v360_v18, -inf }
  0xf0   : > { %458 = vmax.xlane.f32.xlu0 %v457_v23 }
  0xf4   : > { %461 = vmax.xlane.f32.xlu0 %v460_v25  ;;  %v405_v26 = vpop.f32.mrb[4].mxu0  ;;  %v451_v27 = vpop.f32.mrb[4].mxu1 }
  0xf5   : > { %v406_v28 = vadd.f32 %v800_v13, %v405_v26  ;;  %v847_v29 = vpop.f32.mrb[5].mxu0  ;;  %v452_v30 = vadd.f32 %v800_v13, %v451_v27  ;;  %v853_v31 = vpop.f32.mrb[5].mxu1 }
  0xf6   : > { %v408_v32 = vpop.f32.mrb[6].mxu0  ;;  %v454_v33 = vpop.f32.mrb[6].mxu1 }
  0xf7   : > { %v848_v34 = vpop.f32.mrb[7].mxu0  ;;  %v463_v35 = vsel %vm272_vm1, %v406_v28, -inf  ;;  %v854_v36 = vpop.f32.mrb[7].mxu1  ;;  %v466_v37 = vsel %vm272_vm1, %v452_v30, -inf }
  0xf8   : > { %464 = vmax.xlane.f32.xlu1 %v463_v35 }
  0xfc   : > { %467 = vmax.xlane.f32.xlu1 %v466_v37 }
 0x17d   : > { %v459_v38 = vpop.xlane.xlu0 %458 }
 0x17e   : > { %v469_v39 = vsub.f32 %v314_v16, %v459_v38 }
 0x180   : > { %v473_v40 = vmul.f32 1.442695, %v469_v39 }
 0x181   : > { %v462_v41 = vpop.xlane.xlu0 %461 }
 0x182   : > { %889 = vpow2.f32 %v473_v40  ;;  %v470_v42 = vsub.f32 %v360_v18, %v462_v41 }
 0x184   : > { %v475_v43 = vmul.f32 1.442695, %v470_v42 }
 0x185   : > { %v465_v44 = vpop.xlane.xlu1 %464 }
 0x186   : > { %891 = vpow2.f32 %v475_v43  ;;  %v471_v45 = vsub.f32 %v406_v28, %v465_v44 }
 0x188   : > { %v477_v46 = vmul.f32 1.442695, %v471_v45 }
 0x189   : > { %v468_v47 = vpop.xlane.xlu1 %467 }
 0x18a   : > { %893 = vpow2.f32 %v477_v46  ;;  %v472_v48 = vsub.f32 %v452_v30, %v468_v47 }
 0x18c   : > { %v890_v49 = vpop.eup %889  ;;  %v479_v50 = vmul.f32 1.442695, %v472_v48 }
 0x18d   : > { %v481_v51 = vsel %vm272_vm1, %v890_v49, 0.0 }
 0x18e   : > { %895 = vpow2.f32 %v479_v50  ;;  %482 = vadd.xlane.f32.xlu0 %v481_v51 }
 0x190   : > { %v892_v52 = vpop.eup %891 }
 0x191   : > { %v484_v53 = vsel %vm272_vm1, %v892_v52, 0.0 }
 0x192   : > { %485 = vadd.xlane.f32.xlu1 %v484_v53 }
 0x194   : > { %v894_v54 = vpop.eup %893 }
 0x195   : > { %v487_v55 = vsel %vm272_vm1, %v894_v54, 0.0 }
 0x196   : > { %488 = vadd.xlane.f32.xlu0 %v487_v55 }
 0x198   : > { %v896_v56 = vpop.eup %895 }
 0x199   : > { %v490_v57 = vsel %vm272_vm1, %v896_v56, 0.0 }
 0x19a   : > { %491 = vadd.xlane.f32.xlu1 %v490_v57 }
 0x21b   : > { %v483_v3 = vpop.xlane.xlu0 %482 }
 0x21c   : > { %897 = vrcp.f32 %v483_v3 }
 0x21f   : > { %v486_v4 = vpop.xlane.xlu1 %485 }
 0x220   : > { %899 = vrcp.f32 %v486_v4 }
 0x223   : > { %v489_v5 = vpop.xlane.xlu0 %488 }
 0x224   : > { %901 = vrcp.f32 %v489_v5 }
 0x226   : > { %v898_v6 = vpop.eup %897 }
 0x227   : > { %v497_v7 = vmul.f32 %v898_v6, %v890_v49  ;;  %v492_v8 = vpop.xlane.xlu1 %491 }
 0x228   : > { %903 = vrcp.f32 %v492_v8 }
 0x229   : > { %v501_v9 = vpack.c.bf16 %v497_v7, %v497_v7 }
 0x22a   : > { %v900_v10 = vpop.eup %899 }
 0x22b   : > { %v498_v11 = vmul.f32 %v900_v10, %v892_v52  ;;  %858 = vmatmul.mubr.msk.bf16.vlgmr.msra.gmra.mrb[8].mxu0 %vm272_vm1, %v501_v9 }
 0x22c   : > { %868 = vmatpush3.bf16.msra.mxu0 %v602_v63  ;;  %869 = vmatprep.mubr.msk.bf16.mxu0 %vm914_vm0, %v913_v0 }
 0x22d   : > { %v502_v12 = vpack.c.bf16 %v498_v11, %v498_v11 }
 0x22e   : > { %v902_v13 = vpop.eup %901 }
 0x22f   : > { %v499_v14 = vmul.f32 %v902_v13, %v894_v54  ;;  %864 = vmatmul.mubr.msk.bf16.vlgmr.msra.gmra.mrb[8].mxu1 %vm272_vm1, %v502_v12 }
 0x230   : > { %874 = vmatpush3.bf16.msra.mxu1 %v648_v2  ;;  %875 = vmatprep.mubr.msk.bf16.mxu1 %vm914_vm0, %v913_v0 }
 0x231   : > { %v503_v15 = vpack.c.bf16 %v499_v14, %v499_v14 }
 0x232   : > { %v904_v16 = vpop.eup %903 }
 0x233   : > { %v500_v17 = vmul.f32 %v904_v16, %v896_v56  ;;  %870 = vmatmul.mubr.msk.bf16.vlgmr.msra.gmra.mrb[12].mxu0 %vm272_vm1, %v503_v15 }
 0x235   : > { %v504_v18 = vpack.c.bf16 %v500_v17, %v500_v17 }
 0x237   : > { %876 = vmatmul.mubr.msk.bf16.vlgmr.msra.gmra.mrb[12].mxu1 %vm272_vm1, %v504_v18 }
 0x2fe   : > { %v546_v19 = vpop.f32.mrb[8].mxu0 }
 0x2ff   : > { %v690_v20 = vpack.c.bf16 %v546_v19, %v546_v19  ;;  %v859_v21 = vpop.f32.mrb[9].mxu0 }
 0x300   : > { %v549_v22 = vpop.f32.mrb[10].mxu0 }
 0x301   : > { %695 = vst.msk [vmem:[%s251_s6] sm:$0xf] %vm694_vm3, %v690_v20  ;;  %v860_v0 = vpop.f32.mrb[11].mxu0 }
 0x302   : > { %v592_v23 = vpop.f32.mrb[8].mxu1 }
 0x303   : > { %v691_v24 = vpack.c.bf16 %v592_v23, %v592_v23  ;;  %v865_v25 = vpop.f32.mrb[9].mxu1 }
 0x304   : > { %v595_v26 = vpop.f32.mrb[10].mxu1 }
 0x305   : > { %696 = vst.msk [vmem:[%s251_s6 + $0x4] sm:$0xf] %vm694_vm3, %v691_v24  ;;  %v866_v27 = vpop.f32.mrb[11].mxu1 }
 0x306   : > { %v638_v28 = vpop.f32.mrb[12].mxu0 }
 0x307   : > { %v692_v29 = vpack.c.bf16 %v638_v28, %v638_v28  ;;  %v871_v30 = vpop.f32.mrb[13].mxu0 }
 0x308   : > { %v641_v31 = vpop.f32.mrb[14].mxu0 }
 0x309   : > { %697 = vst.msk [vmem:[%s251_s6 + $0x8] sm:$0xf] %vm694_vm3, %v692_v29  ;;  %v872_v32 = vpop.f32.mrb[15].mxu0 }
 0x30a   : > { %v684_v33 = vpop.f32.mrb[12].mxu1 }
 0x30b   : > { %v693_v34 = vpack.c.bf16 %v684_v33, %v684_v33  ;;  %v877_v35 = vpop.f32.mrb[13].mxu1 }
 0x30c   : > { %v687_v36 = vpop.f32.mrb[14].mxu1 }
 0x30d   : > { %698 = vst.msk [vmem:[%s251_s6 + $0xc] sm:$0xf] %vm694_vm3, %v693_v34  ;;  %v878_v37 = vpop.f32.mrb[15].mxu1 }
 0x30e PF: > { %s14_s15 = sadd.s32 1, %s911_s15  }
 0x30f   : > { %p11_p4 = scmp.ge.s32.totalorder %s14_s15, 4  }
 0x311   :  { %13 = sbr.rel (!%p11_p4) target bundleno = 1 (0x1), region = 75 }

// kernel: transformer_s2s_forward.30
= control target key start
LH: loop header
LB: loop body
LE: loop exit
PB: predicated region body
PF: predicated region fallthrough
CT: control target
= control target key end

     0   :  { %v314_v0 = vmov 0.0   ;;  %vm315_vm0 = vmmov 0   ;;  %vm68_vm1 = vcmask 261120   ;;  %vm148_vm2 = vcmask 523264   ;;  %s400_s1 = inlined_call_operand.vmem [shape: bf16[32,64], index: 1, kind: input, shape index: {}]   ;;  %s401_s0 = inlined_call_operand.vmem [shape: bf16[16,32], index: 0, kind: input, shape index: {}]   ;;  %s402_s3 = inlined_call_operand.vmem [shape: bf16[64,32], index: 3, kind: input, shape index: {}]   ;;  %s403_s2 = inlined_call_operand.vmem [shape: f32[1,64], index: 2, kind: input, shape index: {}]   ;;  %s404_s4 = inlined_call_operand.vmem [shape: f32[1,32], index: 4, kind: input, shape index: {}]   ;;  %s405_s5 = inlined_call_operand.vmem [shape: f32[1,32], index: 5, kind: input, shape index: {}]   ;;  %s406_s6 = inlined_call_operand.vmem [shape: f32[1,32], index: 6, kind: input, shape index: {}]   ;;  %s407_s7 = inlined_call_operand.vmem [shape: bf16[16,32], index: 7, kind: output, shape index: {}]  }
   0x1   :  { %280 = vmatprep.subr.bf16.mxu0 %v314_v0  ;;  %v302_v1 = vld [vmem:[%s400_s1] sm:$0xff]   ;;  %284 = vmatprep.mubr.msk.bf16.mxu0 %vm315_vm0, %v314_v0  ;;  %v303_v2 = vld [vmem:[%s400_s1 + $0x8] sm:$0xff]   ;;  %v307_v6 = vld [vmem:[%s402_s3 + $0x10] sm:$0xff]   ;;  %vm248_vm3 = vcmask 257024  }
   0x2   :  { %288 = vmatprep.subr.bf16.mxu1 %v314_v0  ;;  %296 = vmatprep.mubr.msk.bf16.mxu1 %vm315_vm0, %v314_v0  ;;  %v27_v3 = vld [vmem:[%s401_s0] sm:$0xff]   ;;  %v306_v5 = vld [vmem:[%s402_s3 + $0x8] sm:$0xff]   ;;  %v308_v7 = vld [vmem:[%s402_s3 + $0x18] sm:$0xff]  }
   0x3   :  { %281 = vmatpush3.bf16.msra.mxu0 %v302_v1  ;;  %v305_v4 = vld [vmem:[%s402_s3] sm:$0xff]   ;;  %v29_v18 = vunpack.c.l.bf16 %v27_v3  ;;  %v30_v20 = vunpack.c.h.bf16 %v27_v3 }
   0x4   :  { %282 = vmatprep.subr.bf16.mxu0 %v314_v0  ;;  %289 = vmatpush3.bf16.msra.mxu1 %v305_v4  ;;  %v256_v8 = vld [vmem:[%s403_s2] ss:$0 sm:$0xff] }
   0x5   :  { %290 = vmatprep.subr.bf16.mxu1 %v314_v0  ;;  %v255_v19 = vld [vmem:[%s404_s4] ss:$0 sm:$0xff] }
   0x6   :  { %v38_v21 = vadd.f32 %v255_v19, %v29_v18  ;;  %v39_v22 = vadd.f32 %v255_v19, %v30_v20  ;;  %v266_v48 = vld [vmem:[%s405_s5] ss:$0 sm:$0xff] }
   0x7   :  { %283 = vmatpush3.bf16.msra.mxu0 %v303_v2  ;;  %v267_v50 = vld [vmem:[%s406_s6] ss:$0 sm:$0xff] }
   0x8   :  { %291 = vmatpush3.bf16.msra.mxu1 %v306_v5 }
   0x9   :  { %292 = vmatprep.subr.bf16.mxu1 %v314_v0 }
   0xa   :  { %285 = vmatmul.mubr.msk.bf16.vlgmr.msra.gmra.mrb[0].mxu0 %vm68_vm1, %v27_v3 }
   0xc   :  { %293 = vmatpush3.bf16.msra.mxu1 %v307_v6 }
   0xd   :  { %294 = vmatprep.subr.bf16.mxu1 %v314_v0 }
  0x10   :  { %295 = vmatpush3.bf16.msra.mxu1 %v308_v7 }
  0xdd   :  { %v106_v9 = vpop.f32.mrb[0].mxu0 }
  0xde   :  { %v107_v10 = vadd.f32 %v256_v8, %v106_v9  ;;  %v286_v11 = vpop.f32.mrb[1].mxu0 }
  0xdf   :  { %v109_v12 = vpop.f32.mrb[2].mxu0 }
  0xe0   :  { %v110_v13 = vadd.f32 %v256_v8, %v109_v12  ;;  %v287_v14 = vpop.f32.mrb[3].mxu0  ;;  %v113_v15 = vmax.f32 %v107_v10, 0.0 }
  0xe2   :  { %v114_v16 = vmax.f32 %v110_v13, 0.0 }
  0xe4   :  { %v115_v17 = vpack.c.bf16 %v114_v16, %v113_v15 }
  0xe6   :  { %297 = vmatmul.mubr.msk.bf16.vlgmr.msra.gmra.mrb[0].mxu1 %vm148_vm2, %v115_v17 }
 0x1b9   :  { %v186_v23 = vpop.f32.mrb[0].mxu1 }
 0x1ba   :  { %v193_v24 = vadd.f32 %v186_v23, %v38_v21  ;;  %v298_v25 = vpop.f32.mrb[1].mxu1 }
 0x1bb   :  { %v189_v26 = vpop.f32.mrb[2].mxu1 }
 0x1bc   :  { %v194_v27 = vadd.f32 %v189_v26, %v39_v22  ;;  %v299_v28 = vpop.f32.mrb[3].mxu1  ;;  %v195_v29 = vsel %vm68_vm1, %v193_v24, 0.0 }
 0x1bd   :  { %196 = vadd.xlane.f32.xlu0 %v195_v29 }
 0x1be   :  { %v198_v30 = vsel %vm68_vm1, %v194_v27, 0.0 }
 0x1c1   :  { %199 = vadd.xlane.f32.xlu0 %v198_v30 }
 0x24a   :  { %v197_v31 = vpop.xlane.xlu0 %196 }
 0x24b   :  { %v202_v32 = vmul.f32 0.03125, %v197_v31 }
 0x24d   :  { %v204_v33 = vsub.f32 %v193_v24, %v202_v32 }
 0x24e   :  { %v200_v34 = vpop.xlane.xlu0 %199 }
 0x24f   :  { %v203_v35 = vmul.f32 0.03125, %v200_v34  ;;  %v206_v36 = vmul.f32 %v204_v33, %v204_v33 }
 0x251   :  { %v205_v37 = vsub.f32 %v194_v27, %v203_v35  ;;  %v208_v38 = vsel %vm68_vm1, %v206_v36, 0.0 }
 0x252   :  { %209 = vadd.xlane.f32.xlu1 %v208_v38 }
 0x253   :  { %v207_v39 = vmul.f32 %v205_v37, %v205_v37 }
 0x255   :  { %v211_v40 = vsel %vm68_vm1, %v207_v39, 0.0 }
 0x256   :  { %212 = vadd.xlane.f32.xlu1 %v211_v40 }
 0x2df   :  { %v210_v41 = vpop.xlane.xlu1 %209 }
 0x2e0   :  { %v214_v42 = vmul.f32 0.03125, %v210_v41 }
 0x2e2   :  { %v216_v43 = vadd.f32 1e-05, %v214_v42 }
 0x2e3   :  { %v213_v44 = vpop.xlane.xlu1 %212 }
 0x2e4   :  { %310 = vrsqrt.f32 %v216_v43  ;;  %v215_v45 = vmul.f32 0.03125, %v213_v44 }
 0x2e6   :  { %v217_v46 = vadd.f32 1e-05, %v215_v45 }
 0x2e8   :  { %312 = vrsqrt.f32 %v217_v46 }
 0x2ee   :  { %v311_v47 = vpop.eup %310 }
 0x2ef   :  { %v220_v49 = vmul.f32 %v311_v47, %v204_v33 }
 0x2f1   :  { %v229_v51 = vmul.f32 %v266_v48, %v220_v49 }
 0x2f2   :  { %v313_v52 = vpop.eup %312 }
 0x2f3   :  { %v238_v53 = vadd.f32 %v267_v50, %v229_v51  ;;  %v221_v54 = vmul.f32 %v313_v52, %v205_v37 }
 0x2f5   :  { %v270_v55 = vpack.c.bf16 %v238_v53, %v238_v53  ;;  %v230_v56 = vmul.f32 %v266_v48, %v221_v54 }
 0x2f7   :  { %249 = vst.msk [vmem:[%s407_s7] sm:$0xf] %vm248_vm3, %v270_v55  ;;  %v239_v57 = vadd.f32 %v267_v50, %v230_v56 }
 0x2f9   :  { %v271_v58 = vpack.c.bf16 %v239_v57, %v239_v57 }
 0x2fb   :  { %250 = vst.msk [vmem:[%s407_s7 + $0x4] sm:$0xf] %vm248_vm3, %v271_v58 }

// kernel: transformer_s2s_forward.53
= control target key start
LH: loop header
LB: loop body
LE: loop exit
PB: predicated region body
PF: predicated region fallthrough
CT: control target
= control target key end

     0   :  { %v157_v1 = vmov 0.0   ;;  %vm158_vm0 = vmmov 0   ;;  %s206_s0 = inlined_call_operand.vmem [shape: bf16[16,32], index: 0, kind: input, shape index: {}]   ;;  %s207_s1 = inlined_call_operand.vmem [shape: bf16[32,128], index: 1, kind: input, shape index: {}]   ;;  %s208_s2 = inlined_call_operand.vmem [shape: f32[1,128], index: 2, kind: input, shape index: {}]   ;;  %s209_s3 = inlined_call_operand.hbm [shape: f32[16,128], index: 3, kind: output, shape index: {}]  }
   0x1   :  { %v130_v0 = vld [vmem:[%s207_s1] sm:$0xff]   ;;  %117 = vmatprep.subr.bf16.mxu0 %v157_v1  ;;  %v131_v2 = vld [vmem:[%s207_s1 + $0x8] sm:$0xff]   ;;  %121 = vmatprep.mubr.msk.bf16.mxu0 %vm158_vm0, %v157_v1 }
   0x2   :  { %118 = vmatpush3.bf16.msra.mxu0 %v130_v0 }
   0x3   :  { %119 = vmatprep.subr.bf16.mxu0 %v157_v1 }
   0x4   :  { %8 = vsyncpa [#allocation3], 0  ;;  %v132_v3 = vld [vmem:[%s206_s0] sm:$0xff]   ;;  %vm46_vm1 = vcmask 261120   ;;  %s159_s20 = smov [#allocation2]  }
   0x5   :  { %v109_v4 = vld [vmem:[%s208_s2] ss:$0 sm:$0xff]  ;;  %s98_s21 = sshll.u32 %s159_s20, 4  ;;  %s99_s21 = int_to_ptr.vmem [resolvable:$true] %s98_s21 }
   0x6   :  { %120 = vmatpush3.bf16.msra.mxu0 %v131_v2  ;;  %s133_s1 = scalar_lea.vmem %s99_s21, 256  ;;  %p138_p1 = scmp.lt.s32.totalorder %s99_s21, %s99_s21 }
   0x7   :  { %p134_p0 = scmp.ne.s32.totalorder %s99_s21, %s133_s1  ;;  %p139_p2 = scmp.lt.s32.totalorder %s133_s1, %s133_s1 }
   0x9   :  { %122 = vmatmul.mubr.msk.bf16.vlgmr.msra.gmra.mrb[0].mxu0 %vm46_vm1, %v132_v3  ;;  %p140_p3 = por %p139_p2, %p138_p1 }
   0xb   :  { %p141_p4 = pnand %p140_p3, %p134_p0 }
  0xdc   :  { %v84_v5 = vpop.f32.mrb[0].mxu0 }
  0xdd   :  { %v85_v6 = vadd.f32 %v109_v4, %v84_v5  ;;  %v123_v7 = vpop.f32.mrb[1].mxu0 }
  0xde   :  { %v87_v8 = vpop.f32.mrb[2].mxu0 }
  0xdf   :  { %91 = vst [vmem:[#allocation2] sm:$0xff] %v85_v6  ;;  %v88_v9 = vadd.f32 %v109_v4, %v87_v8  ;;  %v124_v10 = vpop.f32.mrb[3].mxu0 }
  0xe1   :  { %92 = vst [vmem:[#allocation2 + $0x8] sm:$0xff] %v88_v9 }
  0xe2   :  { %144 = shalt.err (!%p141_p4)
}
  0xe3   :  { %s145_s22 = scalar_lea.hbm %s209_s3, 256 }
  0xe4   :  { %p146_p5 = scmp.ne.s32.totalorder %s209_s3, %s145_s22  ;;  %p149_p6 = scmp.lt.u32.totalorder %s145_s22, %s209_s3 }
  0xe6   :  { %p151_p7 = pnand %p149_p6, %p146_p5 }
  0xe8   :  { %154 = shalt.err (!%p151_p7)
}
  0xe9   :  { %s160_s27 = smov 128   ;;  %s161_s28 = smov 8  }
  0xea   :  { %104 = dma.vmem_to_hbm [thread:$0]  %s99_s21, 256, %s209_s3, [#allocation3], %s160_s27, %s160_s27, %s161_s28  }
  0xeb   :  { %155 = dma.done.wait [#allocation3], 256  }
  0xec   :  { %156 = vsyncadd [#allocation3], 4294967040 }
  0xed   :  { %108 = vsyncpa [#allocation3], 1 }

</bundles_post_ra>
